<compile_context>
chip_gen: v6e
topology: v6e:2x2x1
jax: 0.10.0
libtpu: 0.0.40
codegen_flags: <defaults>
</compile_context>

<pallas_src>
import functools
import math

import jax
import jax.numpy as jnp
from jax.experimental import pallas as pl
from jax.experimental.pallas import tpu as pltpu

# ----------------------------- problem constants -----------------------------
POLYORDER = 2
R_DESMO = 4


def binomial_coefficient(n, k):
    if k > n:
        return 0
    return math.factorial(n) // (math.factorial(k) * math.factorial(n - k))


def calculate_number_of_terms(n_vars, polyorder):
    return sum(binomial_coefficient(n_vars + k - 1, k) for k in range(polyorder + 1))


NUM_TERMS = calculate_number_of_terms(R_DESMO, POLYORDER)   # 15 for r=4, order=2
NUM_FEAT = NUM_TERMS + 3 * R_DESMO                          # 27 = poly + sin/cos/tanh


def _round_up(x, k):
    return -(-x // k) * k


def _cdiv(a, b):
    return -(-a // b)


# --------------------------------- kernel ------------------------------------
def desmo_kernel(pre_ref, dict_ref, out_ref, feat_ref, *, r, polyorder, num_feat):
    """One (tm, tn) tile of final_reconstruction.T = dict_T @ features.

    pre_ref : (4r, tn)   rows = [phi_i, w_sin_i*phi_i, w_cos_i*phi_i, w_tanh_i*phi_i]
    dict_ref: (tm, kpad) packed, coefficient-scaled dictionary (transposed, K padded to 32)
    feat_ref: (kpad, tn) VMEM scratch; rebuilt unconditionally every step so both
              grid axes can be "parallel" (v7x megacore) with no ordering hazard.
    """
    x = pre_ref[...]                                     # (4r, tn) float32
    tn = x.shape[1]
    kpad = feat_ref.shape[0]

    feat_ref[0:1, :] = jnp.ones((1, tn), jnp.float32)    # constant term
    feat_ref[1:1 + r, :] = x[0:r, :]                     # linear terms
    k = 1 + r
    if polyorder >= 2:                                   # quadratic terms, i <= j
        for a in range(r):
            for b in range(a, r):
                feat_ref[k:k + 1, :] = x[a:a + 1, :] * x[b:b + 1, :]
                k += 1
    # TODO(synk): polyorder >= 3 library terms not emitted (module default here is 2).
    feat_ref[k:k + r, :] = jnp.sin(x[r:2 * r, :])        # sin features
    k += r
    feat_ref[k:k + r, :] = jnp.cos(x[2 * r:3 * r, :])    # cos features
    k += r
    feat_ref[k:k + r, :] = jnp.tanh(x[3 * r:4 * r, :])   # tanh features
    k += r
    if kpad > num_feat:                                  # zero the K-padding rows
        feat_ref[num_feat:kpad, :] = jnp.zeros((kpad - num_feat, tn), jnp.float32)

    out_ref[...] = jnp.dot(
        dict_ref[...], feat_ref[...], preferred_element_type=jnp.float32
    ).astype(out_ref.dtype)


def desmo_pallas(pre, dict_rows, *, tn_max=2048, tm_max=1024,
                 out_dtype=jnp.float32, vmem_limit_bytes=48 * 1024 * 1024):
    """pre: (4r, n) packed latent + trig args.  dict_rows: (27, m) packed dictionary.

    Returns final_reconstruction.T with shape (m, n), dtype `out_dtype`.
    """
    four_r, n = pre.shape
    r = four_r // 4
    num_feat, m = dict_rows.shape
    assert num_feat == 1 + r + r * (r + 1) // 2 + 3 * r, "packing assumes polyorder == 2"

    itemsize = jnp.dtype(out_dtype).itemsize
    m_align = 8 * max(1, 4 // itemsize)          # 8 for f32, 16 for bf16/f16 outputs

    # Balanced tiling: choose tile counts first, then aligned tile sizes, so the
    # padded store traffic is < one alignment unit per tile (store-bound kernel).
    num_n = max(1, _cdiv(n, tn_max))
    tn = _round_up(_cdiv(n, num_n), 128)         # lane (last) dim of the output tile
    n_pad = tn * num_n
    num_m = max(1, _cdiv(m, tm_max))
    tm = _round_up(_cdiv(m, num_m), m_align)     # sublane dim of the output tile
    m_pad = tm * num_m

    kdim = _round_up(num_feat, 8)                # pad contraction 27 -> 32

    pre_p = pre.astype(jnp.float32)
    if n_pad != n:
        pre_p = jnp.pad(pre_p, ((0, 0), (0, n_pad - n)))
    dict_t = dict_rows.T.astype(jnp.float32)     # tiny (m, 27) transpose
    dict_t = jnp.pad(dict_t, ((0, m_pad - m), (0, kdim - num_feat)))

    kernel = functools.partial(desmo_kernel, r=r, polyorder=POLYORDER, num_feat=num_feat)

    out = pl.pallas_call(
        kernel,
        out_shape=jax.ShapeDtypeStruct((m_pad, n_pad), out_dtype),
        grid=(num_n, num_m),                                    # i over n, j over m
        in_specs=[
            pl.BlockSpec((four_r, tn), lambda i, j: (0, i)),    # packed latent + trig args
            pl.BlockSpec((tm, kdim), lambda i, j: (j, 0)),      # transposed dictionary
        ],
        out_specs=pl.BlockSpec((tm, tn), lambda i, j: (j, i)),  # (m, n) tile, lane-dense stores
        scratch_shapes=[pltpu.VMEM((kdim, tn), jnp.float32)],
        compiler_params=pltpu.CompilerParams(
            # Feature scratch is rebuilt every step, so there is no cross-step
            # ordering requirement and both axes can shard across v7x cores.
            dimension_semantics=("parallel", "parallel"),
            vmem_limit_bytes=vmem_limit_bytes,
        ),
    )(pre_p, dict_t)

    if m_pad != m or n_pad != n:
        out = out[:m, :n]
    return out


# ------------------------------ module wrapper --------------------------------
def desmo_forward(params, pod_modes, *, tn_max=2048, tm_max=1024, out_dtype=jnp.float32):
    """Replicates DESMO.forward: returns (final_reconstruction.T, latent_spatial, z_values)."""
    latent = pod_modes * jnp.stack(params["phi_list"], axis=1)          # (n, r)
    z_values = jnp.stack(params["z_list"], axis=0)                      # (num_terms, m)

    # Fold c_coef / sin_coef / cos_coef / tanh_coef into one (27, m) dictionary.
    dict_rows = jnp.concatenate(
        [
            params["c_coef"][:, None] * z_values,
            params["sin_coef"][:, None] * jnp.stack(params["zsin_list"], axis=0),
            params["cos_coef"][:, None] * jnp.stack(params["zcos_list"], axis=0),
            params["tanh_coef"][:, None] * jnp.stack(params["ztanh_list"], axis=0),
        ],
        axis=0,
    )                                                                   # (27, m)

    # omega_list[3i], [3i+1], [3i+2] = sin / cos / tanh frequency of mode i.
    om = params["omega_list"].reshape(R_DESMO, 3).T                     # (3, r)
    lat_t = latent.T.astype(jnp.float32)                                # (r, n), lane-dense
    pre = jnp.concatenate(
        [lat_t, om[0][:, None] * lat_t, om[1][:, None] * lat_t, om[2][:, None] * lat_t],
        axis=0,
    )                                                                   # (4r, n)

    recon_t = desmo_pallas(pre, dict_rows, tn_max=tn_max, tm_max=tm_max,
                           out_dtype=out_dtype)                         # (m, n) == final.T
    return recon_t, latent, z_values


# ------------------------------ pure-JAX reference -----------------------------
def desmo_reference(params, pod_modes):
    latent = pod_modes * jnp.stack(params["phi_list"], axis=1)
    n, r = latent.shape
    cols = [jnp.ones((n, 1), jnp.float32)]
    for i in range(r):
        cols.append(latent[:, i:i + 1])
    for i in range(r):
        for j in range(i, r):
            cols.append(latent[:, i:i + 1] * latent[:, j:j + 1])
    theta = params["c_coef"] * jnp.concatenate(cols, axis=1)
    z_values = jnp.stack(params["z_list"], axis=0)

    fourier = 0.0
    for i in range(r):
        phi = latent[:, i]
        w_sin, w_cos, w_tanh = params["omega_list"][3 * i: 3 * i + 3]
        fourier = (
            fourier
            + params["sin_coef"][i] * jnp.outer(params["zsin_list"][i], jnp.sin(w_sin * phi))
            + params["cos_coef"][i] * jnp.outer(params["zcos_list"][i], jnp.cos(w_cos * phi))
            + params["tanh_coef"][i] * jnp.outer(params["ztanh_list"][i], jnp.tanh(w_tanh * phi))
        )
    final = theta @ z_values + fourier.T
    return final.T, latent, z_values


# ------------------------------------ main -------------------------------------
if __name__ == "__main__":
    n, m = 256, 640                       # spatial points x time snapshots (small test shapes)
    omega_init = 10.0                     # constructor arg (default 10000); small here for f32 numerics

    key = jax.random.PRNGKey(0)
    keys = jax.random.split(key, 12)

    X = jax.random.normal(keys[0], (n, m), jnp.float32)            # forward() never reads X
    POD_modes = jax.random.normal(keys[1], (n, R_DESMO), jnp.float32)

    params = {
        "phi_list": [1.0 + 0.1 * jax.random.normal(keys[2], (n,), jnp.float32) for _ in range(R_DESMO)],
        "c_coef": 1.0 + 0.1 * jax.random.normal(keys[3], (NUM_TERMS,), jnp.float32),
        "z_list": [0.1 * jax.random.normal(jax.random.fold_in(keys[4], t), (m,), jnp.float32)
                   for t in range(NUM_TERMS)],
        "zsin_list": [0.1 * jax.random.normal(jax.random.fold_in(keys[5], t), (m,), jnp.float32)
                      for t in range(R_DESMO)],
        "zcos_list": [0.1 * jax.random.normal(jax.random.fold_in(keys[6], t), (m,), jnp.float32)
                      for t in range(R_DESMO)],
        "ztanh_list": [0.1 * jax.random.normal(jax.random.fold_in(keys[7], t), (m,), jnp.float32)
                       for t in range(R_DESMO)],
        "sin_coef": jnp.ones((R_DESMO,), jnp.float32),
        "cos_coef": jnp.ones((R_DESMO,), jnp.float32),
        "tanh_coef": jnp.ones((R_DESMO,), jnp.float32),
        "omega_list": omega_init * jnp.ones((3 * R_DESMO,), jnp.float32),
    }

    ref_recon, ref_latent, ref_z = desmo_reference(params, POD_modes)

    # Default (large, lane-dense, balanced) tiles, f32 output.
    recon, latent, z_values = jax.jit(desmo_forward)(params, POD_modes)
    jax.block_until_ready(recon)
    assert recon.shape == (m, n) and latent.shape == (n, R_DESMO) and z_values.shape == (NUM_TERMS, m)
    assert jnp.allclose(recon, ref_recon, atol=2e-3, rtol=2e-3)
    assert jnp.allclose(latent, ref_latent, atol=1e-5, rtol=1e-5)
    assert jnp.allclose(z_values, ref_z)

    # Forced small tiles: exercises the multi-tile grid, balanced-tiling padding
    # (m=640 -> tm=216, m_pad=648), and the per-step feature rebuild.
    recon_s, _, _ = jax.jit(
        functools.partial(desmo_forward, tn_max=128, tm_max=256)
    )(params, POD_modes)
    jax.block_until_ready(recon_s)
    assert jnp.allclose(recon_s, ref_recon, atol=2e-3, rtol=2e-3)

    # Opt-in bf16 output path (store-bound kernel -> ~2x fewer output bytes).
    recon_bf16, _, _ = jax.jit(
        functools.partial(desmo_forward, out_dtype=jnp.bfloat16)
    )(params, POD_modes)
    jax.block_until_ready(recon_bf16)
    assert recon_bf16.dtype == jnp.bfloat16
    assert jnp.allclose(recon_bf16.astype(jnp.float32), ref_recon, atol=3e-2, rtol=3e-2)

    print("KERNEL_OK")
</pallas_src>

<mosaic_0001>
module attributes {stable_mosaic.version = 11 : i64} {
  func.func @desmo_kernel(%arg0: i32, %arg1: i32, %arg2: memref<16x256xf32, #tpu.memory_space<vmem>>, %arg3: memref<640x32xf32, #tpu.memory_space<vmem>>, %arg4: memref<640x256xf32, #tpu.memory_space<vmem>>, %arg5: memref<32x256xf32, #tpu.memory_space<vmem>>) attributes {dimension_semantics = [#tpu.dimension_semantics<parallel>, #tpu.dimension_semantics<parallel>], iteration_bounds = array<i64: 1, 1>, scalar_prefetch = 0 : i64, scratch_operands = 1 : i64, tpu.core_type = #tpu.core_type<tc>, window_params = [{transform_indices = @transform_0, window_bounds = array<i64: 16, 256>}, {transform_indices = @transform_1, window_bounds = array<i64: 640, 32>}, {transform_indices = @transform_2, window_bounds = array<i64: 640, 256>}]} {
    %c0 = arith.constant 0 : index
    %c0_0 = arith.constant 0 : index
    %0 = vector.load %arg2[%c0, %c0_0] : memref<16x256xf32, #tpu.memory_space<vmem>>, vector<16x256xf32>
    %cst = arith.constant 1.000000e+00 : f32
    %1 = vector.broadcast %cst : f32 to vector<1x256xf32>
    %c0_1 = arith.constant 0 : index
    %c0_2 = arith.constant 0 : index
    %2 = vector.load %arg5[%c0_1, %c0_2] : memref<32x256xf32, #tpu.memory_space<vmem>>, vector<1x256xf32>
    tpu.vector_store %arg5[%c0_1, %c0_2], %1 {strides = array<i32>} : memref<32x256xf32, #tpu.memory_space<vmem>>, vector<1x256xf32>,
    %3 = vector.extract_strided_slice %0 {offsets = [0, 0], sizes = [4, 256], strides = [1, 1]} : vector<16x256xf32> to vector<4x256xf32>
    %c1 = arith.constant 1 : index
    %c0_3 = arith.constant 0 : index
    %4 = vector.load %arg5[%c1, %c0_3] : memref<32x256xf32, #tpu.memory_space<vmem>>, vector<4x256xf32>
    tpu.vector_store %arg5[%c1, %c0_3], %3 {strides = array<i32>} : memref<32x256xf32, #tpu.memory_space<vmem>>, vector<4x256xf32>,
    %5 = vector.extract_strided_slice %0 {offsets = [0, 0], sizes = [1, 256], strides = [1, 1]} : vector<16x256xf32> to vector<1x256xf32>
    %6 = vector.extract_strided_slice %0 {offsets = [0, 0], sizes = [1, 256], strides = [1, 1]} : vector<16x256xf32> to vector<1x256xf32>
    %7 = arith.mulf %5, %6 : vector<1x256xf32>
    %c5 = arith.constant 5 : index
    %c0_4 = arith.constant 0 : index
    %8 = vector.load %arg5[%c5, %c0_4] : memref<32x256xf32, #tpu.memory_space<vmem>>, vector<1x256xf32>
    tpu.vector_store %arg5[%c5, %c0_4], %7 {strides = array<i32>} : memref<32x256xf32, #tpu.memory_space<vmem>>, vector<1x256xf32>,
    %9 = vector.extract_strided_slice %0 {offsets = [0, 0], sizes = [1, 256], strides = [1, 1]} : vector<16x256xf32> to vector<1x256xf32>
    %10 = vector.extract_strided_slice %0 {offsets = [1, 0], sizes = [1, 256], strides = [1, 1]} : vector<16x256xf32> to vector<1x256xf32>
    %11 = arith.mulf %9, %10 : vector<1x256xf32>
    %c6 = arith.constant 6 : index
    %c0_5 = arith.constant 0 : index
    %12 = vector.load %arg5[%c6, %c0_5] : memref<32x256xf32, #tpu.memory_space<vmem>>, vector<1x256xf32>
    tpu.vector_store %arg5[%c6, %c0_5], %11 {strides = array<i32>} : memref<32x256xf32, #tpu.memory_space<vmem>>, vector<1x256xf32>,
    %13 = vector.extract_strided_slice %0 {offsets = [0, 0], sizes = [1, 256], strides = [1, 1]} : vector<16x256xf32> to vector<1x256xf32>
    %14 = vector.extract_strided_slice %0 {offsets = [2, 0], sizes = [1, 256], strides = [1, 1]} : vector<16x256xf32> to vector<1x256xf32>
    %15 = arith.mulf %13, %14 : vector<1x256xf32>
    %c7 = arith.constant 7 : index
    %c0_6 = arith.constant 0 : index
    %16 = vector.load %arg5[%c7, %c0_6] : memref<32x256xf32, #tpu.memory_space<vmem>>, vector<1x256xf32>
    tpu.vector_store %arg5[%c7, %c0_6], %15 {strides = array<i32>} : memref<32x256xf32, #tpu.memory_space<vmem>>, vector<1x256xf32>,
    %17 = vector.extract_strided_slice %0 {offsets = [0, 0], sizes = [1, 256], strides = [1, 1]} : vector<16x256xf32> to vector<1x256xf32>
    %18 = vector.extract_strided_slice %0 {offsets = [3, 0], sizes = [1, 256], strides = [1, 1]} : vector<16x256xf32> to vector<1x256xf32>
    %19 = arith.mulf %17, %18 : vector<1x256xf32>
    %c8 = arith.constant 8 : index
    %c0_7 = arith.constant 0 : index
    %20 = vector.load %arg5[%c8, %c0_7] : memref<32x256xf32, #tpu.memory_space<vmem>>, vector<1x256xf32>
    tpu.vector_store %arg5[%c8, %c0_7], %19 {strides = array<i32>} : memref<32x256xf32, #tpu.memory_space<vmem>>, vector<1x256xf32>,
    %21 = vector.extract_strided_slice %0 {offsets = [1, 0], sizes = [1, 256], strides = [1, 1]} : vector<16x256xf32> to vector<1x256xf32>
    %22 = vector.extract_strided_slice %0 {offsets = [1, 0], sizes = [1, 256], strides = [1, 1]} : vector<16x256xf32> to vector<1x256xf32>
    %23 = arith.mulf %21, %22 : vector<1x256xf32>
    %c9 = arith.constant 9 : index
    %c0_8 = arith.constant 0 : index
    %24 = vector.load %arg5[%c9, %c0_8] : memref<32x256xf32, #tpu.memory_space<vmem>>, vector<1x256xf32>
    tpu.vector_store %arg5[%c9, %c0_8], %23 {strides = array<i32>} : memref<32x256xf32, #tpu.memory_space<vmem>>, vector<1x256xf32>,
    %25 = vector.extract_strided_slice %0 {offsets = [1, 0], sizes = [1, 256], strides = [1, 1]} : vector<16x256xf32> to vector<1x256xf32>
    %26 = vector.extract_strided_slice %0 {offsets = [2, 0], sizes = [1, 256], strides = [1, 1]} : vector<16x256xf32> to vector<1x256xf32>
    %27 = arith.mulf %25, %26 : vector<1x256xf32>
    %c10 = arith.constant 10 : index
    %c0_9 = arith.constant 0 : index
    %28 = vector.load %arg5[%c10, %c0_9] : memref<32x256xf32, #tpu.memory_space<vmem>>, vector<1x256xf32>
    tpu.vector_store %arg5[%c10, %c0_9], %27 {strides = array<i32>} : memref<32x256xf32, #tpu.memory_space<vmem>>, vector<1x256xf32>,
    %29 = vector.extract_strided_slice %0 {offsets = [1, 0], sizes = [1, 256], strides = [1, 1]} : vector<16x256xf32> to vector<1x256xf32>
    %30 = vector.extract_strided_slice %0 {offsets = [3, 0], sizes = [1, 256], strides = [1, 1]} : vector<16x256xf32> to vector<1x256xf32>
    %31 = arith.mulf %29, %30 : vector<1x256xf32>
    %c11 = arith.constant 11 : index
    %c0_10 = arith.constant 0 : index
    %32 = vector.load %arg5[%c11, %c0_10] : memref<32x256xf32, #tpu.memory_space<vmem>>, vector<1x256xf32>
    tpu.vector_store %arg5[%c11, %c0_10], %31 {strides = array<i32>} : memref<32x256xf32, #tpu.memory_space<vmem>>, vector<1x256xf32>,
    %33 = vector.extract_strided_slice %0 {offsets = [2, 0], sizes = [1, 256], strides = [1, 1]} : vector<16x256xf32> to vector<1x256xf32>
    %34 = vector.extract_strided_slice %0 {offsets = [2, 0], sizes = [1, 256], strides = [1, 1]} : vector<16x256xf32> to vector<1x256xf32>
    %35 = arith.mulf %33, %34 : vector<1x256xf32>
    %c12 = arith.constant 12 : index
    %c0_11 = arith.constant 0 : index
    %36 = vector.load %arg5[%c12, %c0_11] : memref<32x256xf32, #tpu.memory_space<vmem>>, vector<1x256xf32>
    tpu.vector_store %arg5[%c12, %c0_11], %35 {strides = array<i32>} : memref<32x256xf32, #tpu.memory_space<vmem>>, vector<1x256xf32>,
    %37 = vector.extract_strided_slice %0 {offsets = [2, 0], sizes = [1, 256], strides = [1, 1]} : vector<16x256xf32> to vector<1x256xf32>
    %38 = vector.extract_strided_slice %0 {offsets = [3, 0], sizes = [1, 256], strides = [1, 1]} : vector<16x256xf32> to vector<1x256xf32>
    %39 = arith.mulf %37, %38 : vector<1x256xf32>
    %c13 = arith.constant 13 : index
    %c0_12 = arith.constant 0 : index
    %40 = vector.load %arg5[%c13, %c0_12] : memref<32x256xf32, #tpu.memory_space<vmem>>, vector<1x256xf32>
    tpu.vector_store %arg5[%c13, %c0_12], %39 {strides = array<i32>} : memref<32x256xf32, #tpu.memory_space<vmem>>, vector<1x256xf32>,
    %41 = vector.extract_strided_slice %0 {offsets = [3, 0], sizes = [1, 256], strides = [1, 1]} : vector<16x256xf32> to vector<1x256xf32>
    %42 = vector.extract_strided_slice %0 {offsets = [3, 0], sizes = [1, 256], strides = [1, 1]} : vector<16x256xf32> to vector<1x256xf32>
    %43 = arith.mulf %41, %42 : vector<1x256xf32>
    %c14 = arith.constant 14 : index
    %c0_13 = arith.constant 0 : index
    %44 = vector.load %arg5[%c14, %c0_13] : memref<32x256xf32, #tpu.memory_space<vmem>>, vector<1x256xf32>
    tpu.vector_store %arg5[%c14, %c0_13], %43 {strides = array<i32>} : memref<32x256xf32, #tpu.memory_space<vmem>>, vector<1x256xf32>,
    %45 = vector.extract_strided_slice %0 {offsets = [4, 0], sizes = [4, 256], strides = [1, 1]} : vector<16x256xf32> to vector<4x256xf32>
    %46 = math.sin %45 : vector<4x256xf32>
    %c15 = arith.constant 15 : index
    %c0_14 = arith.constant 0 : index
    %47 = vector.load %arg5[%c15, %c0_14] : memref<32x256xf32, #tpu.memory_space<vmem>>, vector<4x256xf32>
    tpu.vector_store %arg5[%c15, %c0_14], %46 {strides = array<i32>} : memref<32x256xf32, #tpu.memory_space<vmem>>, vector<4x256xf32>,
    %48 = vector.extract_strided_slice %0 {offsets = [8, 0], sizes = [4, 256], strides = [1, 1]} : vector<16x256xf32> to vector<4x256xf32>
    %49 = math.cos %48 : vector<4x256xf32>
    %c19 = arith.constant 19 : index
    %c0_15 = arith.constant 0 : index
    %50 = vector.load %arg5[%c19, %c0_15] : memref<32x256xf32, #tpu.memory_space<vmem>>, vector<4x256xf32>
    tpu.vector_store %arg5[%c19, %c0_15], %49 {strides = array<i32>} : memref<32x256xf32, #tpu.memory_space<vmem>>, vector<4x256xf32>,
    %51 = vector.extract_strided_slice %0 {offsets = [12, 0], sizes = [4, 256], strides = [1, 1]} : vector<16x256xf32> to vector<4x256xf32>
    %52 = math.tanh %51 : vector<4x256xf32>
    %c23 = arith.constant 23 : index
    %c0_16 = arith.constant 0 : index
    %53 = vector.load %arg5[%c23, %c0_16] : memref<32x256xf32, #tpu.memory_space<vmem>>, vector<4x256xf32>
    tpu.vector_store %arg5[%c23, %c0_16], %52 {strides = array<i32>} : memref<32x256xf32, #tpu.memory_space<vmem>>, vector<4x256xf32>,
    %cst_17 = arith.constant 0.000000e+00 : f32
    %54 = vector.broadcast %cst_17 : f32 to vector<5x256xf32>
    %c27 = arith.constant 27 : index
    %c0_18 = arith.constant 0 : index
    %55 = vector.load %arg5[%c27, %c0_18] : memref<32x256xf32, #tpu.memory_space<vmem>>, vector<5x256xf32>
    tpu.vector_store %arg5[%c27, %c0_18], %54 {strides = array<i32>} : memref<32x256xf32, #tpu.memory_space<vmem>>, vector<5x256xf32>,
    %c0_19 = arith.constant 0 : index
    %c0_20 = arith.constant 0 : index
    %56 = vector.load %arg3[%c0_19, %c0_20] : memref<640x32xf32, #tpu.memory_space<vmem>>, vector<640x32xf32>
    %c0_21 = arith.constant 0 : index
    %c0_22 = arith.constant 0 : index
    %57 = vector.load %arg5[%c0_21, %c0_22] : memref<32x256xf32, #tpu.memory_space<vmem>>, vector<32x256xf32>
    %cst_23 = arith.constant dense<0.000000e+00> : vector<640x256xf32>
    %58 = tpu.matmul %56, %57, %cst_23 {dimension_numbers = #tpu.dot_dimension_numbers<[1], [0], [0], [1], [0, 0, 1, 1], [], []>} : vector<640x32xf32>, vector<32x256xf32>, vector<640x256xf32> -> vector<640x256xf32>
    %c0_24 = arith.constant 0 : index
    %c0_25 = arith.constant 0 : index
    %59 = vector.load %arg4[%c0_24, %c0_25] : memref<640x256xf32, #tpu.memory_space<vmem>>, vector<640x256xf32>
    tpu.vector_store %arg4[%c0_24, %c0_25], %58 {strides = array<i32>} : memref<640x256xf32, #tpu.memory_space<vmem>>, vector<640x256xf32>,
    return
  }
  func.func @transform_0(%arg0: i32, %arg1: i32) -> (i32, i32) {
    %c0_i32 = arith.constant 0 : i32
    %c0_i32_0 = arith.constant 0 : i32
    return %c0_i32, %arg0 : i32, i32
  }
  func.func @transform_1(%arg0: i32, %arg1: i32) -> (i32, i32) {
    %c0_i32 = arith.constant 0 : i32
    %c0_i32_0 = arith.constant 0 : i32
    return %arg1, %c0_i32 : i32, i32
  }
  func.func @transform_2(%arg0: i32, %arg1: i32) -> (i32, i32) {
    %c0_i32 = arith.constant 0 : i32
    return %arg1, %arg0 : i32, i32
  }
}

</mosaic_0001>

<bundles_post_ra>
// kernel: desmo_forward.1
= control target key start
LH: loop header
LB: loop body
LE: loop exit
PB: predicated region body
PF: predicated region fallthrough
CT: control target
= control target key end

     0   :  { %v1855_v3 = vmov 0.0   ;;  %s2767_s0 = inlined_call_operand.vmem [shape: f32[16,256], index: 0, kind: input, shape index: {}]   ;;  %s2768_s1 = inlined_call_operand.vmem [shape: f32[640,32], index: 1, kind: input, shape index: {}]   ;;  %s2769_s2 = inlined_call_operand.hbm [shape: f32[640,256], index: 2, kind: output, shape index: {}]  }
   0x1   :  { %v1885_v0 = vld [vmem:[%s2767_s0 + $0x18] sm:$0xff]  ;;  %v1890_v1 = vld [vmem:[%s2767_s0 + $0x10] sm:$0xff]  ;;  %630 = vst [vmem:[#allocation2 + $0x38] sm:$0xf8] %v1855_v3  ;;  %629 = vst [vmem:[#allocation2 + $0x30] sm:$0xf8] %v1855_v3  ;;  %1024 = vmatprep.mubr.f32.mxu0 %v1855_v3  ;;  %1264 = vmatprep.mubr.f32.mxu1 %v1855_v3 }
   0x2   :  { %v509_v2 = vand.u32 2139095040, %v1885_v0  ;;  %1813 = vtanh.f32 %v1885_v0  ;;  %v406_v4 = vand.u32 2139095040, %v1890_v1  ;;  %v1900_v5 = vld [vmem:[%s2767_s0 + $0x8] sm:$0xff]  ;;  %v506_v10 = vand.u32 2147483647, %v1885_v0 }
   0x3   :  { %1815 = vtanh.f32 %v1890_v1  ;;  %v289_v8 = vand.u32 2147483647, %v1900_v5  ;;  %v292_v9 = vand.u32 2139095040, %v1900_v5 }
   0x4   :  { %v510_v6 = vshrl.u32 %v509_v2, 23  ;;  %v407_v7 = vshrl.u32 %v406_v4, 23 }
   0x5   :  { %7 = vsyncpa [#allocation4], 0  ;;  %v296_v12 = vand.u32 8388607, %v289_v8  ;;  %v293_v13 = vshrl.u32 %v292_v9, 23  ;;  %v1915_v20 = vld [vmem:[%s2767_s0] sm:$0xff] }
   0x6   :  { %v1693_v11 = vadd.s32 4294967169, %v510_v6  ;;  %v513_v14 = vand.u32 8388607, %v506_v10  ;;  %v1689_v16 = vadd.s32 4294967169, %v407_v7  ;;  %v185_v26 = vand.u32 2147483647, %v1915_v20 }
   0x7   :  { %v297_v17 = vor.u32 8388608, %v296_v12  ;;  %v1685_v18 = vadd.s32 4294967169, %v293_v13  ;;  %v188_v29 = vand.u32 2139095040, %v1915_v20  ;;  %v1856_v32 = vmov 683565275  }
   0x8   :  { %v516_v15 = vadd.s32 1, %v1693_v11  ;;  %v514_v19 = vor.u32 8388608, %v513_v14  ;;  %v1919_v24 = vadd.s32 1, %v1689_v16  ;;  %v1857_v34 = vmov 2475754826  }
   0x9   :  { %v299_v22 = vadd.s32 1, %v1685_v18  ;;  %v1921_v25 = vshll.u32 %v297_v17, 8  ;;  %v1858_v39 = vmov 2131351028   ;;  %v1859_v41 = vmov 2102212464  }
   0xa   :  { %vm517_vm0 = vcmp.gt.s32.totalorder %v516_v15, 0  ;;  %v1926_v28 = vshll.u32 %v514_v19, 8  ;;  %v1860_v54 = vmov 920167782   ;;  %v1861_v61 = vmov 1326507024  }
   0xb   :  { %v518_v21 = vsel %vm517_vm0, %v516_v15, 0  ;;  %vm300_vm1 = vcmp.gt.s32.totalorder %v299_v22, 0  ;;  %vm414_vm11 = vcmp.gt.s32.totalorder %v1919_v24, 0  ;;  %vm291_vm14 = vcmp.lt.s32.totalorder %v1900_v5, 0 }
   0xc   :  { %v1917_v23 = vand.u32 31, %v518_v21  ;;  %v1924_v27 = vshrl.u32 %v518_v21, 5  ;;  %v301_v30 = vsel %vm300_vm1, %v299_v22, 0  ;;  %vm2037_vm15 = vcmp.le.f32.partialorder %v289_v8, 0.7853982 }
   0xd   :  { %v302_v37 = vshrl.u32 %v301_v30, 5  ;;  %v303_v38 = vand.u32 31, %v301_v30 }
   0xe   :  { %v1930_v31 = vsub.s32 32, %v1917_v23  ;;  %v523_v33 = vshll.u32 %v1856_v32, %v1917_v23  ;;  %v526_v35 = vshll.u32 %v1857_v34, %v1917_v23  ;;  %v529_v40 = vshll.u32 %v1858_v39, %v1917_v23 }
   0xf   :  { %v1814_v36 = vpop.eup %1813  ;;  %v532_v42 = vshll.u32 %v1859_v41, %v1917_v23  ;;  %v304_v49 = vsub.s32 32, %v303_v38  ;;  %v306_v50 = vshll.u32 %v1856_v32, %v303_v38  ;;  %v309_v51 = vshll.u32 %v1857_v34, %v303_v38 }
  0x10   :  { %v1816_v43 = vpop.eup %1815  ;;  %v622_v44 = vrot.slane %v1814_v36, 5  ;;  %v1942_v45 = vshrl.u32 %v1856_v32, %v1930_v31  ;;  %v524_v46 = vshrl.u32 %v1857_v34, %v1930_v31  ;;  %v527_v47 = vshrl.u32 %v1858_v39, %v1930_v31 }
  0x11   :  { %v621_v48 = vrot.slane %v1816_v43, 5  ;;  %v312_v52 = vshll.u32 %v1858_v39, %v303_v38  ;;  %v315_v53 = vshll.u32 %v1859_v41, %v303_v38  ;;  %v318_v55 = vshll.u32 %v1860_v54, %v303_v38 }
  0x12   :  { %628 = vst [vmem:[#allocation2 + $0x38] ss:$-12 sps:$4 sm:$0x87] %v622_v44   ;;  %vm321_vm2 = vcmp.lt.s32.totalorder %v302_v37, 1  ;;  %v305_v56 = vshrl.u32 %v1856_v32, %v304_v49  ;;  %v307_v57 = vshrl.u32 %v1857_v34, %v304_v49  ;;  %v310_v58 = vshrl.u32 %v1858_v39, %v304_v49 }
  0x13   :  { %627 = vst [vmem:[#allocation2 + $0x30] ss:$-12 sps:$4 sm:$0x87] %v621_v48   ;;  %v313_v59 = vshrl.u32 %v1859_v41, %v304_v49  ;;  %v316_v60 = vshrl.u32 %v1860_v54, %v304_v49  ;;  %v319_v62 = vshrl.u32 %v1861_v61, %v304_v49  ;;  %vm322_vm3 = vcmp.lt.s32.totalorder %v302_v37, 2 }
  0x14   :  { %vm323_vm4 = vcmp.lt.s32.totalorder %v302_v37, 3  ;;  %v308_v63 = vor.u32 %v307_v57, %v306_v50  ;;  %v311_v2 = vor.u32 %v310_v58, %v309_v51  ;;  %vm324_vm5 = vcmp.lt.s32.totalorder %v302_v37, 4 }
  0x15   :  { %v314_v4 = vor.u32 %v313_v59, %v312_v52  ;;  %v317_v6 = vor.u32 %v316_v60, %v315_v53  ;;  %v320_v7 = vor.u32 %v319_v62, %v318_v55  ;;  %v525_v9 = vor.u32 %v524_v46, %v523_v33 }
  0x16   :  { %v528_v11 = vor.u32 %v527_v47, %v526_v35  ;;  %v325_v12 = vsel %vm321_vm2, %v305_v56, %v308_v63  ;;  %v329_v14 = vsel %vm321_vm2, %v308_v63, %v311_v2  ;;  %v530_v19 = vshrl.u32 %v1859_v41, %v1930_v31 }
  0x17   :  { %v326_v13 = vsel %vm324_vm5, %v314_v4, 2102212464  ;;  %v333_v15 = vsel %vm321_vm2, %v311_v2, %v314_v4  ;;  %v330_v17 = vsel %vm324_vm5, %v317_v6, 920167782  ;;  %v334_v18 = vsel %vm324_vm5, %v320_v7, 1326507024 }
  0x18   :  { %v327_v16 = vsel %vm323_vm4, %v311_v2, %v326_v13  ;;  %v331_v30 = vsel %vm323_vm4, %v314_v4, %v330_v17  ;;  %v335_v33 = vsel %vm323_vm4, %v317_v6, %v334_v18  ;;  %v533_v35 = vshrl.u32 %v1860_v54, %v1930_v31 }
  0x19   :  { %v718_v21 = vld [vmem:[#allocation2 + $0x38] sm:$0xff]  ;;  %v328_v22 = vsel %vm322_vm3, %v325_v12, %v327_v16  ;;  %v332_v38 = vsel %vm322_vm3, %v329_v14, %v331_v30  ;;  %v336_v43 = vsel %vm322_vm3, %v333_v15, %v335_v33  ;;  %vm538_vm6 = vcmp.lt.s32.totalorder %v1924_v27, 1 }
  0x1a   :  { %984 = vmatprep.subr.mxu0 %v718_v21  ;;  %1777 = vmatprep.subr.mxu1 %v718_v21  ;;  %v717_v36 = vld [vmem:[#allocation2 + $0x30] sm:$0xff]  ;;  %v344_v44 = vmul.u32 %v1921_v25, %v328_v22  ;;  %v1975_v46 = vmul.u32.u64.low %v1921_v25, %v336_v43  ;;  %v1976_v47 = vmul.u32.u64.high %v1921_v25, %v336_v43, %v1975_v46  ;;  %v531_v50 = vor.u32 %v530_v19, %v529_v40 }
  0x1b   :  { %985 = vmatpush1.msra.mxu0 %v717_v36  ;;  %1781 = vmatpush1.msra.mxu1 %v717_v36  ;;  %v1979_v48 = vmul.u32.u64.low %v1921_v25, %v332_v38  ;;  %v1980_v49 = vmul.u32.u64.high %v1921_v25, %v332_v38, %v1979_v48  ;;  %v534_v51 = vor.u32 %v533_v35, %v532_v42  ;;  %v535_v37 = vshll.u32 %v1860_v54, %v1917_v23 }
  0x1c   :  { %v536_v52 = vshrl.u32 %v1861_v61, %v1930_v31  ;;  %vm539_vm7 = vcmp.lt.s32.totalorder %v1924_v27, 2  ;;  %vm540_vm8 = vcmp.lt.s32.totalorder %v1924_v27, 3  ;;  %vm541_vm9 = vcmp.lt.s32.totalorder %v1924_v27, 4 }
  0x1d   :  { %v542_v53 = vsel %vm538_vm6, %v1942_v45, %v525_v9  ;;  %v543_v55 = vsel %vm541_vm9, %v531_v50, 2102212464  ;;  %v546_v40 = vsel %vm538_vm6, %v525_v9, %v528_v11  ;;  %v547_v42 = vsel %vm541_vm9, %v534_v51, 920167782 }
  0x1e   :  { %v537_v25 = vor.u32 %v536_v52, %v535_v37  ;;  %vm346_vm10 = vc.u32 %v1976_v47, %v1979_v48  ;;  %v347_v23 = vadd.s32 1, %v1980_v49  ;;  %v544_v31 = vsel %vm540_vm8, %v528_v11, %v543_v55 }
  0x1f   :  { %v189_v56 = vshrl.u32 %v188_v29, 23  ;;  %v548_v45 = vsel %vm540_vm8, %v531_v50, %v547_v42  ;;  %v550_v57 = vsel %vm538_vm6, %v528_v11, %v531_v50  ;;  %v545_v60 = vsel %vm539_vm7, %v542_v53, %v544_v31 }
  0x20   :  { %v551_v58 = vsel %vm541_vm9, %v537_v25, 1326507024  ;;  %v348_v59 = vsel %vm346_vm10, %v347_v23, %v1980_v49  ;;  %v549_v62 = vsel %vm539_vm7, %v546_v40, %v548_v45  ;;  %v192_v12 = vand.u32 8388607, %v185_v26 }
  0x21   :  { %v552_v29 = vsel %vm540_vm8, %v534_v51, %v551_v58  ;;  %v349_v63 = vadd.s32 %v348_v59, %v344_v44  ;;  %v2015_v4 = vmul.u32.u64.low %v1926_v28, %v549_v62  ;;  %v2016_v6 = vmul.u32.u64.high %v1926_v28, %v549_v62, %v2015_v4 }
  0x22   :  { %v553_v2 = vsel %vm539_vm7, %v550_v57, %v552_v29  ;;  %v1681_v11 = vadd.s32 4294967169, %v189_v56  ;;  %v415_v13 = vsel %vm414_vm11, %v1919_v24, 0  ;;  %v561_v15 = vmul.u32 %v1926_v28, %v545_v60 }
  0x23   :  { %v2019_v7 = vmul.u32.u64.low %v1926_v28, %v553_v2  ;;  %v2020_v9 = vmul.u32.u64.high %v1926_v28, %v553_v2, %v2019_v7  ;;  %v350_v14 = vadd.s32 536870912, %v349_v63  ;;  %v564_v17 = vadd.s32 1, %v2016_v6 }
  0x24   :  { %v195_v16 = vadd.s32 1, %v1681_v11  ;;  %v403_v18 = vand.u32 2147483647, %v1890_v1  ;;  %v2028_v19 = vand.u32 31, %v415_v13  ;;  %v193_v21 = vor.u32 8388608, %v192_v12 }
  0x25   :  { %v351_v27 = vshrl.u32 %v350_v14, 30  ;;  %vm563_vm12 = vc.u32 %v2020_v9, %v2015_v4  ;;  %v2033_v36 = vshrl.u32 %v415_v13, 5  ;;  %v345_v37 = vadd.s32 %v1979_v48, %v1976_v47 }
  0x26   :  { %vm196_vm13 = vcmp.gt.s32.totalorder %v195_v16, 0  ;;  %v565_v33 = vsel %vm563_vm12, %v564_v17, %v2016_v6  ;;  %v2045_v44 = vand.u32 8388607, %v403_v18  ;;  %v2050_v51 = vsub.s32 32, %v2028_v19 }
  0x27   :  { %v352_v22 = vshll.u32 %v351_v27, 30  ;;  %v375_v30 = vsub.s32 4, %v351_v27  ;;  %v197_v24 = vsel %vm196_vm13, %v195_v16, 0  ;;  %v566_v28 = vadd.s32 %v565_v33, %v561_v15 }
  0x28   :  { %v199_v35 = vand.u32 31, %v197_v24  ;;  %v2054_v52 = vshll.u32 %v193_v21, 8  ;;  %v2058_v53 = vshll.u32 %v1856_v32, %v2028_v19  ;;  %v2061_v25 = vadd.s32 %v2015_v4, %v2020_v9 }
  0x29   :  { %v2041_v43 = vsub.s32 %v349_v63, %v352_v22  ;;  %v376_v46 = vsel %vm291_vm14, %v375_v30, %v351_v27  ;;  %v567_v49 = vadd.s32 536870912, %v566_v28  ;;  %v2065_v40 = vshrl.u32 %v197_v24, 5 }
  0x2a   :  { %v200_v50 = vsub.s32 32, %v199_v35  ;;  %v2069_v42 = vshrl.u32 %v1856_v32, %v2050_v51  ;;  %v378_v48 = vsel %vm2037_vm15, 0, %v376_v46  ;;  %v202_v23 = vshll.u32 %v1856_v32, %v199_v35 }
  0x2b   :  { %v355_v8 = vsub.s32 0, %v2041_v43  ;;  %v2063_v55 = vshrl.u32 %v567_v49, 30  ;;  %v411_v31 = vor.u32 8388608, %v2045_v44  ;;  %v205_v57 = vshll.u32 %v1857_v34, %v199_v35 }
  0x2c   :  { %v203_v45 = vshrl.u32 %v1857_v34, %v200_v50  ;;  %v206_v58 = vshrl.u32 %v1858_v39, %v200_v50  ;;  %v208_v60 = vshll.u32 %v1858_v39, %v199_v35  ;;  %v209_v62 = vshrl.u32 %v1859_v41, %v200_v50 }
  0x2d   :  { %v1686_v47 = vmin.u32 %v355_v8, %v2041_v43  ;;  %v569_v56 = vshll.u32 %v2063_v55, 30  ;;  %v211_v29 = vshll.u32 %v1859_v41, %v199_v35  ;;  %v212_v2 = vshrl.u32 %v1860_v54, %v200_v50 }
  0x2e   :  { %v2088_v4 = vshrl.u32 %v1857_v34, %v2050_v51  ;;  %v2092_v6 = vshll.u32 %v1857_v34, %v2028_v19  ;;  %v2094_v9 = vadd.s32 3, %v378_v48  ;;  %v214_v11 = vshll.u32 %v1860_v54, %v199_v35 }
  0x2f   :  { %v357_v59 = vclz %v1686_v47  ;;  %v2083_v63 = vsub.s32 %v566_v28, %v569_v56  ;;  %v215_v12 = vshrl.u32 %v1861_v61, %v200_v50  ;;  %v201_v14 = vshrl.u32 %v1856_v32, %v200_v50 }
  0x30   :  { %v204_v15 = vor.u32 %v203_v45, %v202_v23  ;;  %v207_v16 = vor.u32 %v206_v58, %v205_v57  ;;  %v210_v27 = vor.u32 %v209_v62, %v208_v60  ;;  %v213_v17 = vor.u32 %v212_v2, %v211_v29 }
  0x31   :  { %v1687_v7 = vadd.s32 4294967294, %v357_v59  ;;  %v572_v13 = vsub.s32 0, %v2083_v63  ;;  %vm217_vm1 = vcmp.lt.s32.totalorder %v2065_v40, 1  ;;  %v216_v22 = vor.u32 %v215_v12, %v214_v11 }
  0x32   :  { %vm218_vm2 = vcmp.lt.s32.totalorder %v2065_v40, 2  ;;  %vm219_vm3 = vcmp.lt.s32.totalorder %v2065_v40, 3  ;;  %vm220_vm4 = vcmp.lt.s32.totalorder %v2065_v40, 4  ;;  %v221_v28 = vsel %vm217_vm1, %v201_v14, %v204_v15 }
  0x33   :  { %vm1688_vm0 = vcmp.lt.s32.totalorder %v1687_v7, 0  ;;  %v1694_v21 = vmin.u32 %v572_v13, %v2083_v63  ;;  %v225_v35 = vsel %vm217_vm1, %v204_v15, %v207_v16  ;;  %v222_v50 = vsel %vm220_vm4, %v210_v27, 2102212464 }
  0x34   :  { %v360_v34 = vsel %vm1688_vm0, 0, %v1687_v7  ;;  %vm508_vm5 = vcmp.lt.s32.totalorder %v1885_v0, 0  ;;  %v223_v47 = vsel %vm219_vm3, %v207_v16, %v222_v50  ;;  %v229_v23 = vsel %vm217_vm1, %v207_v16, %v210_v27 }
  0x35   :  { %v361_v30 = vsub.s32 32, %v360_v34  ;;  %v362_v33 = vshll.u32 %v2041_v43, %v360_v34  ;;  %v365_v24 = vsub.s32 4294967266, %v360_v34  ;;  %v574_v32 = vclz %v1694_v21 }
  0x36   :  { %v226_v43 = vsel %vm220_vm4, %v213_v17, 920167782  ;;  %v224_v45 = vsel %vm218_vm2, %v221_v28, %v223_v47  ;;  %v230_v58 = vsel %vm220_vm4, %v216_v22, 1326507024  ;;  %v592_v16 = vsub.s32 4, %v2063_v55 }
  0x37   :  { %v363_v46 = vshrl.u32 %v345_v37, %v361_v30  ;;  %v366_v49 = vadd.s32 127, %v365_v24  ;;  %v1695_v8 = vadd.s32 4294967294, %v574_v32  ;;  %v227_v48 = vsel %vm219_vm3, %v210_v27, %v226_v43 }
  0x38   :  { %v228_v57 = vsel %vm218_vm2, %v225_v35, %v227_v48  ;;  %v231_v7 = vsel %vm219_vm3, %v213_v17, %v230_v58  ;;  %vm2144_vm7 = vcmp.le.f32.partialorder %v506_v10, 0.7853982  ;;  %v240_v22 = vmul.u32 %v2054_v52, %v224_v45 }
  0x39   :  { %v364_v37 = vor.u32 %v363_v46, %v362_v33  ;;  %v367_v56 = vshll.u32 %v366_v49, 23  ;;  %vm1696_vm6 = vcmp.lt.s32.totalorder %v1695_v8, 0  ;;  %v232_v14 = vsel %vm218_vm2, %v229_v23, %v231_v7 }
  0x3a   :  { %v2128_v59 = vmul.u32.u64.low %v2054_v52, %v228_v57  ;;  %v2129_v60 = vmul.u32.u64.high %v2054_v52, %v228_v57, %v2128_v59  ;;  %v577_v2 = vsel %vm1696_vm6, 0, %v1695_v8  ;;  %v424_v33 = vshrl.u32 %v1858_v39, %v2050_v51 }
  0x3b   :  { %v368_v62 = vor.u32 4788187, %v367_v56  ;;  %v371_v29 = vcvt.s32.f32 %v364_v37  ;;  %v578_v11 = vsub.s32 32, %v577_v2  ;;  %v579_v12 = vshll.u32 %v2083_v63, %v577_v2 }
  0x3c   :  { %v582_v13 = vsub.s32 4294967266, %v577_v2  ;;  %v2139_v27 = vmul.u32.u64.low %v2054_v52, %v232_v14  ;;  %v2140_v34 = vmul.u32.u64.high %v2054_v52, %v232_v14, %v2139_v27  ;;  %v243_v40 = vadd.s32 1, %v2129_v60 }
  0x3d   :  { %v369_v15 = vand.u32 2147483647, %v368_v62  ;;  %v580_v17 = vshrl.u32 %v2061_v25, %v578_v11  ;;  %v426_v24 = vshll.u32 %v1858_v39, %v2028_v19  ;;  %v427_v10 = vshrl.u32 %v1859_v41, %v2050_v51 }
  0x3e   :  { %v583_v63 = vadd.s32 127, %v582_v13  ;;  %v429_v25 = vshll.u32 %v1859_v41, %v2028_v19  ;;  %v430_v52 = vshrl.u32 %v1860_v54, %v2050_v51  ;;  %v593_v46 = vsel %vm508_vm5, %v592_v16, %v2063_v55 }
  0x3f   :  { %v372_v30 = vmul.f32 %v371_v29, %v369_v15  ;;  %v581_v32 = vor.u32 %v580_v17, %v579_v12  ;;  %vm242_vm8 = vc.u32 %v2140_v34, %v2128_v59  ;;  %v422_v39 = vor.u32 %v2088_v4, %v2058_v53 }
  0x40   :  { %v584_v28 = vshll.u32 %v583_v63, 23  ;;  %v244_v43 = vsel %vm242_vm8, %v243_v40, %v2129_v60  ;;  %v425_v41 = vor.u32 %v424_v33, %v2092_v6  ;;  %v428_v48 = vor.u32 %v427_v10, %v426_v24 }
  0x41   :  { %v373_v35 = vxor.u32 2147483648, %v372_v30  ;;  %v588_v50 = vcvt.s32.f32 %v581_v32  ;;  %v245_v47 = vadd.s32 %v244_v43, %v240_v22  ;;  %v432_v55 = vshll.u32 %v1860_v54, %v2028_v19 }
  0x42   :  { %v585_v49 = vor.u32 4788187, %v584_v28  ;;  %v431_v53 = vor.u32 %v430_v52, %v429_v25  ;;  %v433_v4 = vshrl.u32 %v1861_v61, %v2050_v51  ;;  %vm435_vm9 = vcmp.lt.s32.totalorder %v2033_v36, 1 }
  0x43   :  { %v374_v8 = vsel %vm291_vm14, %v373_v35, %v372_v30  ;;  %v246_v56 = vadd.s32 536870912, %v245_v47  ;;  %vm437_vm10 = vcmp.lt.s32.totalorder %v2033_v36, 3  ;;  %vm438_vm11 = vcmp.lt.s32.totalorder %v2033_v36, 4 }
  0x44   :  { %v377_v23 = vsel %vm2037_vm15, %v1900_v5, %v374_v8  ;;  %v586_v37 = vand.u32 2147483647, %v585_v49  ;;  %v434_v45 = vor.u32 %v433_v4, %v432_v55  ;;  %v2183_v54 = vand.u32 3, %v2094_v9 }
  0x45   :  { %1817 = vcosq.f32 %v377_v23  ;;  %v595_v19 = vsel %vm2144_vm7, 0, %v593_v46  ;;  %v2187_v38 = vshrl.u32 %v246_v56, 30  ;;  %v440_v61 = vsel %vm438_vm11, %v428_v48, 2102212464 }
  0x46   :  { %1819 = vsinq.f32 %v377_v23  ;;  %v589_v6 = vmul.f32 %v588_v50, %v586_v37  ;;  %vm436_vm12 = vcmp.lt.s32.totalorder %v2033_v36, 2  ;;  %v443_v57 = vsel %vm435_vm9, %v422_v39, %v425_v41 }
  0x47   :  { %v444_v58 = vsel %vm438_vm11, %v431_v53, 920167782  ;;  %v248_v60 = vshll.u32 %v2187_v38, 30  ;;  %v439_v9 = vsel %vm435_vm9, %v2069_v42, %v422_v39  ;;  %v447_v29 = vsel %vm435_vm9, %v425_v41, %v428_v48 }
  0x48   :  { %v590_v51 = vxor.u32 2147483648, %v589_v6  ;;  %v445_v62 = vsel %vm437_vm10, %v428_v48, %v444_v58  ;;  %v441_v7 = vsel %vm437_vm10, %v425_v41, %v440_v61  ;;  %v448_v11 = vsel %vm438_vm11, %v434_v45, 1326507024 }
  0x49   :  { %v451_v12 = vshll.u32 %v411_v31, 8  ;;  %v2209_v13 = vsub.s32 %v245_v47, %v248_v60  ;;  %v446_v14 = vsel %vm436_vm12, %v443_v57, %v445_v62  ;;  %v449_v15 = vsel %vm437_vm10, %v431_v53, %v448_v11 }
  0x4a   :  { %v591_v2 = vsel %vm508_vm5, %v590_v51, %v589_v6  ;;  %v450_v16 = vsel %vm436_vm12, %v447_v29, %v449_v15  ;;  %vm381_vm13 = vweird.f32 %v1900_v5  ;;  %v2218_v44 = vand.u32 3, %v595_v19 }
  0x4b   :  { %v594_v42 = vsel %vm2144_vm7, %v1885_v0, %v591_v2  ;;  %v251_v31 = vsub.s32 0, %v2209_v13  ;;  %v442_v27 = vsel %vm436_vm12, %v439_v9, %v441_v7  ;;  %vm384_vm14 = vcmp.lt.s32.totalorder %v2183_v54, 2 }
  0x4c   :  { %1821 = vcosq.f32 %v594_v42  ;;  %v2223_v21 = vmul.u32.u64.low %v451_v12, %v450_v16  ;;  %v2224_v17 = vmul.u32.u64.high %v451_v12, %v450_v16, %v2223_v21  ;;  %vm385_vm15 = vcmp.eq.s32.totalorder %v2183_v54, 0 }
  0x4d   :  { %1823 = vsinq.f32 %v594_v42  ;;  %v2226_v63 = vmul.u32.u64.low %v451_v12, %v446_v14  ;;  %v2227_v22 = vmul.u32.u64.high %v451_v12, %v446_v14, %v2226_v63  ;;  %v1682_v40 = vmin.u32 %v251_v31, %v2209_v13 }
  0x4e   :  { %v30_v30 = vmul.f32 %v1915_v20, %v1915_v20  ;;  %v16_v33 = vlaneseq  ;;  %v31_v36 = vmul.f32 %v1900_v5, %v1900_v5  ;;  %v53_v24 = vrot.slane %v1915_v20, 1 }
  0x4f   :  { %vm388_vm0 = vcmp.eq.s32.totalorder %v2183_v54, 2  ;;  %vm604_vm1 = vcmp.eq.s32.totalorder %v2218_v44, 2  ;;  %v253_v10 = vclz %v1682_v40  ;;  %v458_v32 = vmul.u32 %v451_v12, %v442_v27 }
  0x50   :  { %vm601_vm2 = vcmp.eq.s32.totalorder %v2218_v44, 0  ;;  %v241_v25 = vadd.s32 %v2128_v59, %v2140_v34  ;;  %vm460_vm3 = vc.u32 %v2224_v17, %v2226_v63  ;;  %v461_v52 = vadd.s32 1, %v2227_v22 }
  0x51   :  { %v54_v35 = vrot.slane %v1900_v5, 1  ;;  %vm600_vm4 = vcmp.lt.s32.totalorder %v2218_v44, 2  ;;  %v1683_v49 = vadd.s32 4294967294, %v253_v10  ;;  %v34_v50 = vcombine.low %v30_v30, %v31_v36 }
  0x52   :  { %v1818_v28 = vpop.eup %1817  ;;  %v1862_v43 = vmov 1966171168   ;;  %vm598_vm5 = vweird.f32 %v1885_v0  ;;  %v462_v59 = vsel %vm460_vm3, %v461_v52, %v2227_v22  ;;  %v39_v34 = vshrl.u32 %v16_v33, 7 }
  0x53   :  { %v1820_v46 = vpop.eup %1819  ;;  %v389_v39 = vxor.u32 2147483648, %v1818_v28  ;;  %v36_v41 = vunpack.c.l.s4 %v1862_v43  ;;  %v57_v47 = vmul.f32 %v53_v24, %v1915_v20  ;;  %vm1684_vm6 = vcmp.lt.s32.totalorder %v1683_v49, 0 }
  0x54   :  { %v386_v8 = vxor.u32 2147483648, %v1820_v46  ;;  %v463_v55 = vadd.s32 %v462_v59, %v458_v32  ;;  %v256_v53 = vsel %vm1684_vm6, 0, %v1683_v49  ;;  %v58_v4 = vmul.f32 %v54_v35, %v1900_v5 }
  0x55   :  { %v390_v48 = vsel %vm388_vm0, %v389_v39, %v1820_v46  ;;  %v37_v23 = vunpack.c.0.s8 %v36_v41  ;;  %v80_v56 = vrot.slane %v1915_v20, 2  ;;  %v257_v45 = vsub.s32 32, %v256_v53 }
  0x56   :  { %v387_v37 = vsel %vm385_vm15, %v1818_v28, %v386_v8  ;;  %v258_v19 = vshll.u32 %v2209_v13, %v256_v53  ;;  %v261_v61 = vsub.s32 4294967266, %v256_v53  ;;  %v464_v57 = vadd.s32 536870912, %v463_v55 }
  0x57   :  { %v391_v6 = vsel %vm384_vm14, %v387_v37, %v390_v48  ;;  %v2262_v58 = vsub.s32 %v37_v23, %v39_v34  ;;  %v61_v60 = vcombine.low %v57_v47, %v58_v4  ;;  %v259_v29 = vshrl.u32 %v241_v25, %v257_v45 }
  0x58   :  { %v392_v51 = vsel %vm381_vm13, nan, %v391_v6  ;;  %v262_v2 = vadd.s32 127, %v261_v61  ;;  %v81_v7 = vrot.slane %v1900_v5, 2  ;;  %v2265_v12 = vshrl.u32 %v464_v57, 30 }
  0x59   :  { %v1822_v9 = vpop.eup %1821  ;;  %v396_v62 = vrot.slane %v392_v51, 5  ;;  %v41_v42 = vrot.slane %v34_v50, %v2262_v58  ;;  %v68_v13 = vrot.slane %v61_v60, %v2262_v58  ;;  %v260_v15 = vor.u32 %v259_v29, %v258_v19 }
  0x5a   :  { %v1824_v11 = vpop.eup %1823  ;;  %v605_v54 = vxor.u32 2147483648, %v1822_v9  ;;  %v263_v16 = vshll.u32 %v262_v2, 23  ;;  %vm2269_vm7 = vcmp.lt.s32.totalorder %v16_v33, 256  ;;  %v466_v21 = vshll.u32 %v2265_v12, 30 }
  0x5b   :  { %402 = vst [vmem:[#allocation2 + $0x28] ss:$-12 sps:$4 sm:$0x87] %v396_v62   ;;  %v602_v14 = vxor.u32 2147483648, %v1824_v11  ;;  %v48_v22 = vrot.slane %v41_v42, %v2262_v58  ;;  %v84_v40 = vmul.f32 %v80_v56, %v1915_v20  ;;  %v267_v24 = vcvt.s32.f32 %v260_v15 }
  0x5c   :  { %v606_v27 = vsel %vm604_vm1, %v605_v54, %v1824_v11  ;;  %v264_v36 = vor.u32 4788187, %v263_v16  ;;  %v75_v10 = vrot.slane %v68_v13, %v2262_v58  ;;  %v271_v32 = vsub.s32 4, %v2187_v38 }
  0x5d   :  { %v603_v30 = vsel %vm601_vm2, %v1822_v9, %v602_v14  ;;  %v2284_v28 = vsub.s32 %v463_v55, %v466_v21  ;;  %v85_v25 = vmul.f32 %v81_v7, %v1900_v5  ;;  %51 = vst.msk [vmem:[#allocation2 + $0x5] ss:$8 sm:$0x3] %vm2269_vm7, %v48_v22  ;;  %v107_v46 = vrot.slane %v1915_v20, 3 }
  0x5e   :  { %v607_v33 = vsel %vm600_vm4, %v603_v30, %v606_v27  ;;  %v265_v35 = vand.u32 2147483647, %v264_v36  ;;  %78 = vst.msk [vmem:[#allocation2 + $0x6] ss:$8 sm:$0x3] %vm2269_vm7, %v75_v10  ;;  %vm187_vm8 = vcmp.lt.s32.totalorder %v1915_v20, 0  ;;  %v134_v8 = vcombine.high %v41_v42, %v41_v42 }
  0x5f   :  { %v608_v52 = vsel %vm598_vm5, nan, %v607_v33  ;;  %v469_v39 = vsub.s32 0, %v2284_v28  ;;  %v88_v49 = vcombine.low %v84_v40, %v85_v25  ;;  %v108_v43 = vrot.slane %v1900_v5, 3 }
  0x60   :  { %v612_v44 = vrot.slane %v608_v52, 5  ;;  %v268_v50 = vmul.f32 %v267_v24, %v265_v35  ;;  %v111_v41 = vmul.f32 %v107_v46, %v1915_v20  ;;  %vm2300_vm9 = vcmp.le.f32.partialorder %v185_v26, 0.7853982 }
  0x61   :  { %v272_v59 = vsel %vm187_vm8, %v271_v32, %v2187_v38  ;;  %v459_v34 = vadd.s32 %v2226_v63, %v2224_v17  ;;  %v1690_v47 = vmin.u32 %v469_v39, %v2284_v28  ;;  %v95_v55 = vrot.slane %v88_v49, %v2262_v58  ;;  %v649_v32 = vld [vmem:[%s2768_s1 + $0x90] sm:$0xff] }
  0x62   :  { %616 = vst [vmem:[#allocation2 + $0x28] sm:$0x78] %v612_v44  ;;  %v269_v48 = vxor.u32 2147483648, %v268_v50  ;;  %v112_v23 = vmul.f32 %v108_v43, %v1900_v5  ;;  %v141_v37 = vrot.slane %v134_v8, %v2262_v58  ;;  %v146_v53 = vcombine.high %v68_v13, %v68_v13 }
  0x63   :  { %v471_v26 = vclz %v1690_v47  ;;  %v170_v4 = vcombine.high %v48_v22, %v48_v22  ;;  %v175_v56 = vcombine.high %v75_v10, %v75_v10  ;;  %v158_v17 = vcombine.high %v95_v55, %v95_v55 }
  0x64   :  { %v270_v6 = vsel %vm187_vm8, %v269_v48, %v268_v50  ;;  %v115_v38 = vcombine.low %v111_v41, %v112_v23  ;;  %144 = vst.msk [vmem:[#allocation2 + $0x11] ss:$8 sm:$0x3] %vm2269_vm7, %v141_v37  ;;  %v180_v63 = vcombine.high %v141_v37, %v141_v37  ;;  %v153_v61 = vrot.slane %v146_v53, %v2262_v58 }
  0x65   :  { %v273_v45 = vsel %vm2300_vm9, %v1915_v20, %v270_v6  ;;  %v1691_v19 = vadd.s32 4294967294, %v471_v26  ;;  %173 = vst.msk [vmem:[#allocation2 + $0x14] ss:$8 sm:$0x3] %vm2269_vm7, %v170_v4  ;;  %v165_v57 = vrot.slane %v158_v17, %v2262_v58  ;;  %v1863_v60 = vmov 1.0   ;;  %v632_v6 = vld [vmem:[%s2768_s1 + $0x8] sm:$0xff] }
  0x66   :  { %178 = vst.msk [vmem:[#allocation2 + $0x15] ss:$8 sm:$0x3] %vm2269_vm7, %v175_v56  ;;  %1825 = vcosq.f32 %v273_v45  ;;  %v122_v51 = vrot.slane %v115_v38, %v2262_v58  ;;  %183 = vst.msk [vmem:[#allocation2 + $0x16] ss:$8 sm:$0x3] %vm2269_vm7, %v180_v63  ;;  %v102_v62 = vrot.slane %v95_v55, %v2262_v58  ;;  %vm277_vm0 = vweird.f32 %v1915_v20 }
  0x67   :  { %20 = vst.msk [vmem:[#allocation2] ss:$8 sm:$0x3] %vm2269_vm7, %v1863_v60  ;;  %v25_v9 = vrot.slane %v1900_v5, 7  ;;  %1827 = vsinq.f32 %v273_v45  ;;  %vm1692_vm10 = vcmp.lt.s32.totalorder %v1691_v19, 0  ;;  %v24_v29 = vrot.slane %v1915_v20, 7 }
  0x68   :  { %156 = vst.msk [vmem:[#allocation2 + $0x12] ss:$8 sm:$0x3] %vm2269_vm7, %v153_v61  ;;  %v274_v7 = vsel %vm2300_vm9, 0, %v272_v59  ;;  %v474_v11 = vsel %vm1692_vm10, 0, %v1691_v19  ;;  %v129_v54 = vrot.slane %v122_v51, %v2262_v58  ;;  %vm405_vm13 = vcmp.lt.s32.totalorder %v1890_v1, 0 }
  0x69   :  { %v716_v2 = vld [vmem:[#allocation2 + $0x28] sm:$0xff]  ;;  %168 = vst.msk [vmem:[#allocation2 + $0x13] ss:$8 sm:$0x3] %vm2269_vm7, %v165_v57  ;;  %29 = vst [vmem:[#allocation2 + $0x8] sm:$0x1e] %v25_v9  ;;  %v476_v42 = vshll.u32 %v2284_v28, %v474_v11  ;;  %vm495_vm4 = vweird.f32 %v1890_v1 }
  0x6a   :  { %986 = vmatprep.subr.mxu0 %v716_v2  ;;  %1778 = vmatprep.subr.mxu1 %v716_v2  ;;  %v475_v5 = vsub.s32 32, %v474_v11  ;;  %v479_v13 = vsub.s32 4294967266, %v474_v11  ;;  %105 = vst.msk [vmem:[#allocation2 + $0x7] ss:$8 sm:$0x3] %vm2269_vm7, %v102_v62  ;;  %v278_v14 = vadd.s32 3, %v274_v7 }
  0x6b   :  { %28 = vst [vmem:[#allocation2] sm:$0x1e] %v24_v29  ;;  %132 = vst.msk [vmem:[#allocation2 + $0x10] ss:$8 sm:$0x3] %vm2269_vm7, %v129_v54  ;;  %v489_v44 = vsub.s32 4, %v2265_v12 }
  0x6c   :  { %v477_v15 = vshrl.u32 %v459_v34, %v475_v5  ;;  %v480_v58 = vadd.s32 127, %v479_v13  ;;  %v279_v21 = vand.u32 3, %v278_v14  ;;  %vm2349_vm15 = vcmp.le.f32.partialorder %v403_v18, 0.7853982  ;;  %v671_v56 = vld [vmem:[%s2768_s1 + $0x140] sm:$0xff]  ;;  %v672_v38 = vld [vmem:[%s2768_s1 + $0x148] sm:$0xff] }
  0x6d   :  { %v490_v20 = vsel %vm405_vm13, %v489_v44, %v2265_v12  ;;  %vm719_vm5 = vcmask 261120   ;;  %v633_v17 = vld [vmem:[%s2768_s1 + $0x10] sm:$0xff]  ;;  %v634_v45 = vld [vmem:[%s2768_s1 + $0x18] sm:$0xff]  ;;  %v635_v61 = vld [vmem:[%s2768_s1 + $0x20] sm:$0xff] }
  0x6e   :  { %v478_v16 = vor.u32 %v477_v15, %v476_v42  ;;  %v481_v27 = vshll.u32 %v480_v58, 23  ;;  %vm284_vm11 = vcmp.eq.s32.totalorder %v279_v21, 2  ;;  %vm281_vm12 = vcmp.eq.s32.totalorder %v279_v21, 0  ;;  %v673_v63 = vld [vmem:[%s2768_s1 + $0x150] sm:$0xff]  ;;  %v674_v19 = vld [vmem:[%s2768_s1 + $0x158] sm:$0xff]  ;;  %v675_v51 = vld [vmem:[%s2768_s1 + $0x160] sm:$0xff] }
  0x6f   :  { %vm280_vm14 = vcmp.lt.s32.totalorder %v279_v21, 2  ;;  %v492_v50 = vsel %vm2349_vm15, 0, %v490_v20  ;;  %v636_v57 = vld [vmem:[%s2768_s1 + $0x28] sm:$0xff]  ;;  %v637_v9 = vld [vmem:[%s2768_s1 + $0x30] sm:$0xff]  ;;  %v638_v29 = vld [vmem:[%s2768_s1 + $0x38] sm:$0xff] }
  0x70   :  { %v482_v22 = vor.u32 4788187, %v481_v27  ;;  %v485_v40 = vcvt.s32.f32 %v478_v16  ;;  %v496_v43 = vand.u32 3, %v492_v50  ;;  %v676_v60 = vld [vmem:[%s2768_s1 + $0x168] sm:$0xff]  ;;  %v677_v62 = vld [vmem:[%s2768_s1 + $0x170] sm:$0xff]  ;;  %v678_v2 = vld [vmem:[%s2768_s1 + $0x178] sm:$0xff] }
  0x71   :  { %v712_v53 = vld [vmem:[#allocation2 + $0x8] sm:$0xff]  ;;  %v639_v7 = vld [vmem:[%s2768_s1 + $0x40] sm:$0xff]  ;;  %v641_v42 = vld [vmem:[%s2768_s1 + $0x50] sm:$0xff] }
  0x72   :  { %v483_v30 = vand.u32 2147483647, %v482_v22  ;;  %vm501_vm1 = vcmp.eq.s32.totalorder %v496_v43, 2  ;;  %vm498_vm2 = vcmp.eq.s32.totalorder %v496_v43, 0  ;;  %vm497_vm3 = vcmp.lt.s32.totalorder %v496_v43, 2  ;;  %v714_v12 = vld [vmem:[#allocation2 + $0x18] sm:$0xff] }
  0x73   :  { %v1826_v36 = vpop.eup %1825  ;;  %v711_v4 = vld [vmem:[#allocation2] sm:$0xff]  ;;  %v640_v54 = vld [vmem:[%s2768_s1 + $0x48] sm:$0xff]  ;;  %v681_v13 = vld [vmem:[%s2768_s1 + $0x190] sm:$0xff] }
  0x74   :  { %v486_v24 = vmul.f32 %v485_v40, %v483_v30  ;;  %v1828_v10 = vpop.eup %1827  ;;  %v285_v33 = vxor.u32 2147483648, %v1826_v36  ;;  %v679_v11 = vld [vmem:[%s2768_s1 + $0x180] sm:$0xff]  ;;  %v680_v5 = vld [vmem:[%s2768_s1 + $0x188] sm:$0xff]  ;;  %v642_v14 = vld [vmem:[%s2768_s1 + $0x58] sm:$0xff] }
  0x75   :  { %v282_v31 = vxor.u32 2147483648, %v1828_v10  ;;  %v682_v15 = vld [vmem:[%s2768_s1 + $0x198] sm:$0xff]  ;;  %v643_v58 = vld [vmem:[%s2768_s1 + $0x60] sm:$0xff]  ;;  %v644_v27 = vld [vmem:[%s2768_s1 + $0x68] sm:$0xff] }
  0x76   :  { %v487_v28 = vxor.u32 2147483648, %v486_v24  ;;  %v286_v25 = vsel %vm284_vm11, %v285_v33, %v1828_v10  ;;  %v683_v16 = vld [vmem:[%s2768_s1 + $0x1a0] sm:$0xff]  ;;  %v684_v21 = vld [vmem:[%s2768_s1 + $0x1a8] sm:$0xff]  ;;  %v645_v22 = vld [vmem:[%s2768_s1 + $0x70] sm:$0xff] }
  0x77   :  { %v283_v52 = vsel %vm281_vm12, %v1826_v36, %v282_v31  ;;  %v685_v40 = vld [vmem:[%s2768_s1 + $0x1b0] sm:$0xff]  ;;  %v646_v30 = vld [vmem:[%s2768_s1 + $0x78] sm:$0xff]  ;;  %v687_v10 = vld [vmem:[%s2768_s1 + $0x1c0] sm:$0xff] }
  0x78   :  { %v488_v35 = vsel %vm405_vm13, %v487_v28, %v486_v24  ;;  %v287_v46 = vsel %vm280_vm14, %v283_v52, %v286_v25  ;;  %v686_v36 = vld [vmem:[%s2768_s1 + $0x1b8] sm:$0xff]  ;;  %v647_v24 = vld [vmem:[%s2768_s1 + $0x80] sm:$0xff]  ;;  %v648_v33 = vld [vmem:[%s2768_s1 + $0x88] sm:$0xff] }
  0x79   :  { %v491_v39 = vsel %vm2349_vm15, %v1890_v1, %v488_v35  ;;  %v288_v49 = vsel %vm277_vm0, nan, %v287_v46  ;;  %v631_v1 = vld [vmem:[%s2768_s1] sm:$0xff]  ;;  %v688_v31 = vld [vmem:[%s2768_s1 + $0x1c8] sm:$0xff]  ;;  %v689_v28 = vld [vmem:[%s2768_s1 + $0x1d0] sm:$0xff] }
  0x7a   :  { %1829 = vcosq.f32 %v491_v39  ;;  %v395_v18 = vrot.slane %v288_v49, 5  ;;  %v650_v25 = vld [vmem:[%s2768_s1 + $0x98] sm:$0xff]  ;;  %v651_v35 = vld [vmem:[%s2768_s1 + $0xa0] sm:$0xff]  ;;  %v652_v44 = vld [vmem:[%s2768_s1 + $0xa8] sm:$0xff] }
  0x7b   :  { %1831 = vsinq.f32 %v491_v39  ;;  %v690_v52 = vld [vmem:[%s2768_s1 + $0x1d8] sm:$0xff]  ;;  %v691_v46 = vld [vmem:[%s2768_s1 + $0x1e0] sm:$0xff]  ;;  %v692_v39 = vld [vmem:[%s2768_s1 + $0x1e8] sm:$0xff] }
  0x7c   :  { %401 = vst [vmem:[#allocation2 + $0x20] ss:$-12 sps:$4 sm:$0x87] %v395_v18   ;;  %v653_v49 = vld [vmem:[%s2768_s1 + $0xb0] sm:$0xff]  ;;  %v654_v20 = vld [vmem:[%s2768_s1 + $0xb8] sm:$0xff]  ;;  %v655_v43 = vld [vmem:[%s2768_s1 + $0xc0] sm:$0xff] }
  0x7d   :  { %v693_v18 = vld [vmem:[%s2768_s1 + $0x1f0] sm:$0xff]  ;;  %v694_v50 = vld [vmem:[%s2768_s1 + $0x1f8] sm:$0xff] }
  0x83   :  { %v713_v26 = vld [vmem:[#allocation2 + $0x10] sm:$0xff] }
  0x87   :  { %v1830_v41 = vpop.eup %1829 }
  0x88   :  { %v1832_v8 = vpop.eup %1831  ;;  %v502_v0 = vxor.u32 2147483648, %v1830_v41 }
  0x89   :  { %v499_v59 = vxor.u32 2147483648, %v1832_v8 }
  0x8a   :  { %v503_v34 = vsel %vm501_vm1, %v502_v0, %v1832_v8  ;;  %v656_v8 = vld [vmem:[%s2768_s1 + $0xc8] sm:$0xff] }
  0x8b   :  { %v500_v47 = vsel %vm498_vm2, %v1830_v41, %v499_v59  ;;  %v695_v41 = vld [vmem:[%s2768_s1 + $0x200] sm:$0xff]  ;;  %v696_v0 = vld [vmem:[%s2768_s1 + $0x208] sm:$0xff]  ;;  %v657_v59 = vld [vmem:[%s2768_s1 + $0xd0] sm:$0xff] }
  0x8c   :  { %v504_v48 = vsel %vm497_vm3, %v500_v47, %v503_v34  ;;  %v697_v34 = vld [vmem:[%s2768_s1 + $0x210] sm:$0xff]  ;;  %v658_v47 = vld [vmem:[%s2768_s1 + $0xd8] sm:$0xff] }
  0x8d   :  { %v505_v55 = vsel %vm495_vm4, nan, %v504_v48  ;;  %v698_v48 = vld [vmem:[%s2768_s1 + $0x218] sm:$0xff] }
  0x8e   :  { %v611_v23 = vrot.slane %v505_v55, 5  ;;  %v659_v55 = vld [vmem:[%s2768_s1 + $0xe0] sm:$0xff] }
  0x90   :  { %615 = vst [vmem:[#allocation2 + $0x20] sm:$0x78] %v611_v23  ;;  %v699_v23 = vld [vmem:[%s2768_s1 + $0x220] sm:$0xff] }
  0x97   :  { %v715_v37 = vld [vmem:[#allocation2 + $0x20] sm:$0xff] }
  0x98   :  { %987 = vmatpush1.msra.mxu0 %v715_v37  ;;  %1782 = vmatpush1.msra.mxu1 %v715_v37  ;;  %v700_v37 = vld [vmem:[%s2768_s1 + $0x228] sm:$0xff] }
  0x99   :  { %988 = vmatprep.subr.mxu0 %v714_v12  ;;  %1779 = vmatprep.subr.mxu1 %v714_v12  ;;  %v660_v12 = vld [vmem:[%s2768_s1 + $0xe8] sm:$0xff] }
  0x9a   :  { %989 = vmatpush1.msra.mxu0 %v713_v26  ;;  %1783 = vmatpush1.msra.mxu1 %v713_v26  ;;  %v661_v26 = vld [vmem:[%s2768_s1 + $0xf0] sm:$0xff] }
  0x9b   :  { %990 = vmatprep.subr.mxu0 %v712_v53  ;;  %1780 = vmatprep.subr.mxu1 %v712_v53  ;;  %v701_v53 = vld [vmem:[%s2768_s1 + $0x230] sm:$0xff] }
  0x9c   :  { %991 = vmatpush1.msra.mxu0 %v711_v4  ;;  %1784 = vmatpush1.msra.mxu1 %v711_v4  ;;  %v662_v4 = vld [vmem:[%s2768_s1 + $0xf8] sm:$0xff] }
  0x9d   :  { %1697 = vmatmul.mubr.msk.f32.vlgmr.msra.gmra.mxu0 %vm719_vm5, %v631_v1  ;;  %1737 = vmatmul.mubr.msk.f32.vlgmr.msra.gmra.mxu1 %vm719_vm5, %v671_v56  ;;  %v702_v1 = vld [vmem:[%s2768_s1 + $0x238] sm:$0xff]  ;;  %v663_v56 = vld [vmem:[%s2768_s1 + $0x100] sm:$0xff] }
  0x9e   :  { %1030 = vmatprep.mubr.f32.mxu0 %v1855_v3  ;;  %1270 = vmatprep.mubr.f32.mxu1 %v1855_v3 }
  0xa1   :  { %1698 = vmatmul.mubr.msk.f32.gmra.mxu0 %vm719_vm5, %v632_v6  ;;  %1738 = vmatmul.mubr.msk.f32.gmra.mxu1 %vm719_vm5, %v672_v38  ;;  %v703_v6 = vld [vmem:[%s2768_s1 + $0x240] sm:$0xff]  ;;  %v664_v38 = vld [vmem:[%s2768_s1 + $0x108] sm:$0xff] }
  0xa2   :  { %1036 = vmatprep.mubr.f32.mxu0 %v1855_v3  ;;  %1276 = vmatprep.mubr.f32.mxu1 %v1855_v3 }
  0xa5   :  { %1699 = vmatmul.mubr.msk.f32.gmra.mxu0 %vm719_vm5, %v633_v17  ;;  %1739 = vmatmul.mubr.msk.f32.gmra.mxu1 %vm719_vm5, %v673_v63  ;;  %v704_v17 = vld [vmem:[%s2768_s1 + $0x248] sm:$0xff]  ;;  %v665_v63 = vld [vmem:[%s2768_s1 + $0x110] sm:$0xff] }
  0xa6   :  { %1042 = vmatprep.mubr.f32.mxu0 %v1855_v3  ;;  %1282 = vmatprep.mubr.f32.mxu1 %v1855_v3 }
  0xa9   :  { %1700 = vmatmul.mubr.msk.f32.gmra.mxu0 %vm719_vm5, %v634_v45  ;;  %1740 = vmatmul.mubr.msk.f32.gmra.mxu1 %vm719_vm5, %v674_v19  ;;  %v705_v45 = vld [vmem:[%s2768_s1 + $0x250] sm:$0xff]  ;;  %v666_v19 = vld [vmem:[%s2768_s1 + $0x118] sm:$0xff] }
  0xaa   :  { %1048 = vmatprep.mubr.f32.mxu0 %v1855_v3  ;;  %1288 = vmatprep.mubr.f32.mxu1 %v1855_v3 }
  0xad   :  { %1701 = vmatmul.mubr.msk.f32.gmra.mxu0 %vm719_vm5, %v635_v61  ;;  %1741 = vmatmul.mubr.msk.f32.gmra.mxu1 %vm719_vm5, %v675_v51  ;;  %v706_v61 = vld [vmem:[%s2768_s1 + $0x258] sm:$0xff]  ;;  %v667_v51 = vld [vmem:[%s2768_s1 + $0x120] sm:$0xff] }
  0xae   :  { %1054 = vmatprep.mubr.f32.mxu0 %v1855_v3  ;;  %1294 = vmatprep.mubr.f32.mxu1 %v1855_v3 }
  0xb1   :  { %1702 = vmatmul.mubr.msk.f32.gmra.mxu0 %vm719_vm5, %v636_v57  ;;  %1742 = vmatmul.mubr.msk.f32.gmra.mxu1 %vm719_vm5, %v676_v60  ;;  %v707_v57 = vld [vmem:[%s2768_s1 + $0x260] sm:$0xff]  ;;  %v668_v60 = vld [vmem:[%s2768_s1 + $0x128] sm:$0xff] }
  0xb2   :  { %1060 = vmatprep.mubr.f32.mxu0 %v1855_v3  ;;  %1300 = vmatprep.mubr.f32.mxu1 %v1855_v3 }
  0xb5   :  { %1703 = vmatmul.mubr.msk.f32.gmra.mxu0 %vm719_vm5, %v637_v9  ;;  %1743 = vmatmul.mubr.msk.f32.gmra.mxu1 %vm719_vm5, %v677_v62  ;;  %v708_v9 = vld [vmem:[%s2768_s1 + $0x268] sm:$0xff]  ;;  %v669_v62 = vld [vmem:[%s2768_s1 + $0x130] sm:$0xff] }
  0xb6   :  { %1066 = vmatprep.mubr.f32.mxu0 %v1855_v3  ;;  %1306 = vmatprep.mubr.f32.mxu1 %v1855_v3 }
  0xb9   :  { %1704 = vmatmul.mubr.msk.f32.gmra.mxu0 %vm719_vm5, %v638_v29  ;;  %1744 = vmatmul.mubr.msk.f32.gmra.mxu1 %vm719_vm5, %v678_v2  ;;  %v709_v29 = vld [vmem:[%s2768_s1 + $0x270] sm:$0xff]  ;;  %v670_v2 = vld [vmem:[%s2768_s1 + $0x138] sm:$0xff] }
  0xba   :  { %1072 = vmatprep.mubr.f32.mxu0 %v1855_v3  ;;  %1312 = vmatprep.mubr.f32.mxu1 %v1855_v3 }
  0xbd   :  { %1705 = vmatmul.mubr.msk.f32.gmra.mxu0 %vm719_vm5, %v639_v7  ;;  %1745 = vmatmul.mubr.msk.f32.gmra.mxu1 %vm719_vm5, %v679_v11  ;;  %v710_v7 = vld [vmem:[%s2768_s1 + $0x278] sm:$0xff]  ;;  %s1864_s1 = smov [#allocation3]  }
  0xbe   :  { %1078 = vmatprep.mubr.f32.mxu0 %v1855_v3  ;;  %1318 = vmatprep.mubr.f32.mxu1 %v1855_v3  ;;  %s1670_s3 = sshll.u32 %s1864_s1, 4  ;;  %s1671_s3 = int_to_ptr.vmem [resolvable:$true] %s1670_s3 }
  0xbf   :  { %s1833_s4 = scalar_lea.vmem %s1671_s3, 20480  ;;  %p1838_p1 = scmp.lt.s32.totalorder %s1671_s3, %s1671_s3 }
  0xc0   :  { %p1834_p0 = scmp.ne.s32.totalorder %s1671_s3, %s1833_s4  ;;  %p1839_p2 = scmp.lt.s32.totalorder %s1833_s4, %s1833_s4 }
  0xc1   :  { %1706 = vmatmul.mubr.msk.f32.gmra.mxu0 %vm719_vm5, %v640_v54  ;;  %1746 = vmatmul.mubr.msk.f32.gmra.mxu1 %vm719_vm5, %v680_v5 }
  0xc2   :  { %1084 = vmatprep.mubr.f32.mxu0 %v1855_v3  ;;  %1324 = vmatprep.mubr.f32.mxu1 %v1855_v3  ;;  %p1840_p3 = por %p1839_p2, %p1838_p1 }
  0xc4   :  { %p1841_p4 = pnand %p1840_p3, %p1834_p0 }
  0xc5   :  { %1707 = vmatmul.mubr.msk.f32.gmra.mxu0 %vm719_vm5, %v641_v42  ;;  %1747 = vmatmul.mubr.msk.f32.gmra.mxu1 %vm719_vm5, %v681_v13 }
  0xc6   :  { %1090 = vmatprep.mubr.f32.mxu0 %v1855_v3  ;;  %1330 = vmatprep.mubr.f32.mxu1 %v1855_v3 }
  0xc9   :  { %1708 = vmatmul.mubr.msk.f32.gmra.mxu0 %vm719_vm5, %v642_v14  ;;  %1748 = vmatmul.mubr.msk.f32.gmra.mxu1 %vm719_vm5, %v682_v15 }
  0xca   :  { %1096 = vmatprep.mubr.f32.mxu0 %v1855_v3  ;;  %1336 = vmatprep.mubr.f32.mxu1 %v1855_v3 }
  0xcd   :  { %1709 = vmatmul.mubr.msk.f32.gmra.mxu0 %vm719_vm5, %v643_v58  ;;  %1749 = vmatmul.mubr.msk.f32.gmra.mxu1 %vm719_vm5, %v683_v16 }
  0xce   :  { %1102 = vmatprep.mubr.f32.mxu0 %v1855_v3  ;;  %1342 = vmatprep.mubr.f32.mxu1 %v1855_v3 }
  0xd1   :  { %1710 = vmatmul.mubr.msk.f32.gmra.mxu0 %vm719_vm5, %v644_v27  ;;  %1750 = vmatmul.mubr.msk.f32.gmra.mxu1 %vm719_vm5, %v684_v21 }
  0xd2   :  { %1108 = vmatprep.mubr.f32.mxu0 %v1855_v3  ;;  %1348 = vmatprep.mubr.f32.mxu1 %v1855_v3 }
  0xd5   :  { %1711 = vmatmul.mubr.msk.f32.gmra.mxu0 %vm719_vm5, %v645_v22  ;;  %1751 = vmatmul.mubr.msk.f32.gmra.mxu1 %vm719_vm5, %v685_v40 }
  0xd6   :  { %1114 = vmatprep.mubr.f32.mxu0 %v1855_v3  ;;  %1354 = vmatprep.mubr.f32.mxu1 %v1855_v3 }
  0xd9   :  { %1712 = vmatmul.mubr.msk.f32.gmra.mxu0 %vm719_vm5, %v646_v30  ;;  %1752 = vmatmul.mubr.msk.f32.gmra.mxu1 %vm719_vm5, %v686_v36 }
  0xda   :  { %1120 = vmatprep.mubr.f32.mxu0 %v1855_v3  ;;  %1360 = vmatprep.mubr.f32.mxu1 %v1855_v3 }
  0xdd   :  { %1713 = vmatmul.mubr.msk.f32.gmra.mxu0 %vm719_vm5, %v647_v24  ;;  %1753 = vmatmul.mubr.msk.f32.gmra.mxu1 %vm719_vm5, %v687_v10 }
  0xde   :  { %1126 = vmatprep.mubr.f32.mxu0 %v1855_v3  ;;  %1366 = vmatprep.mubr.f32.mxu1 %v1855_v3 }
  0xe1   :  { %1714 = vmatmul.mubr.msk.f32.gmra.mxu0 %vm719_vm5, %v648_v33  ;;  %1754 = vmatmul.mubr.msk.f32.gmra.mxu1 %vm719_vm5, %v688_v31 }
  0xe2   :  { %1132 = vmatprep.mubr.f32.mxu0 %v1855_v3  ;;  %1372 = vmatprep.mubr.f32.mxu1 %v1855_v3 }
  0xe5   :  { %1715 = vmatmul.mubr.msk.f32.gmra.mxu0 %vm719_vm5, %v649_v32  ;;  %1755 = vmatmul.mubr.msk.f32.gmra.mxu1 %vm719_vm5, %v689_v28 }
  0xe6   :  { %1138 = vmatprep.mubr.f32.mxu0 %v1855_v3  ;;  %1378 = vmatprep.mubr.f32.mxu1 %v1855_v3 }
  0xe9   :  { %1716 = vmatmul.mubr.msk.f32.gmra.mxu0 %vm719_vm5, %v650_v25  ;;  %1756 = vmatmul.mubr.msk.f32.gmra.mxu1 %vm719_vm5, %v690_v52 }
  0xea   :  { %1144 = vmatprep.mubr.f32.mxu0 %v1855_v3  ;;  %1384 = vmatprep.mubr.f32.mxu1 %v1855_v3 }
  0xed   :  { %1717 = vmatmul.mubr.msk.f32.gmra.mxu0 %vm719_vm5, %v651_v35  ;;  %1757 = vmatmul.mubr.msk.f32.gmra.mxu1 %vm719_vm5, %v691_v46 }
  0xee   :  { %1150 = vmatprep.mubr.f32.mxu0 %v1855_v3  ;;  %1390 = vmatprep.mubr.f32.mxu1 %v1855_v3 }
  0xf1   :  { %1718 = vmatmul.mubr.msk.f32.gmra.mxu0 %vm719_vm5, %v652_v44  ;;  %1758 = vmatmul.mubr.msk.f32.gmra.mxu1 %vm719_vm5, %v692_v39 }
  0xf2   :  { %1156 = vmatprep.mubr.f32.mxu0 %v1855_v3  ;;  %1396 = vmatprep.mubr.f32.mxu1 %v1855_v3 }
  0xf5   :  { %1719 = vmatmul.mubr.msk.f32.gmra.mxu0 %vm719_vm5, %v653_v49  ;;  %1759 = vmatmul.mubr.msk.f32.gmra.mxu1 %vm719_vm5, %v693_v18 }
  0xf6   :  { %1162 = vmatprep.mubr.f32.mxu0 %v1855_v3  ;;  %1402 = vmatprep.mubr.f32.mxu1 %v1855_v3 }
  0xf9   :  { %1720 = vmatmul.mubr.msk.f32.gmra.mxu0 %vm719_vm5, %v654_v20  ;;  %1760 = vmatmul.mubr.msk.f32.gmra.mxu1 %vm719_vm5, %v694_v50 }
  0xfa   :  { %1168 = vmatprep.mubr.f32.mxu0 %v1855_v3  ;;  %1408 = vmatprep.mubr.f32.mxu1 %v1855_v3 }
  0xfd   :  { %1721 = vmatmul.mubr.msk.f32.gmra.mxu0 %vm719_vm5, %v655_v43  ;;  %1761 = vmatmul.mubr.msk.f32.gmra.mxu1 %vm719_vm5, %v695_v41 }
  0xfe   :  { %1174 = vmatprep.mubr.f32.mxu0 %v1855_v3  ;;  %1414 = vmatprep.mubr.f32.mxu1 %v1855_v3 }
 0x101   :  { %1722 = vmatmul.mubr.msk.f32.gmra.mxu0 %vm719_vm5, %v656_v8  ;;  %1762 = vmatmul.mubr.msk.f32.gmra.mxu1 %vm719_vm5, %v696_v0 }
 0x102   :  { %1180 = vmatprep.mubr.f32.mxu0 %v1855_v3  ;;  %1420 = vmatprep.mubr.f32.mxu1 %v1855_v3 }
 0x105   :  { %1723 = vmatmul.mubr.msk.f32.gmra.mxu0 %vm719_vm5, %v657_v59  ;;  %1763 = vmatmul.mubr.msk.f32.gmra.mxu1 %vm719_vm5, %v697_v34 }
 0x106   :  { %1186 = vmatprep.mubr.f32.mxu0 %v1855_v3  ;;  %1426 = vmatprep.mubr.f32.mxu1 %v1855_v3 }
 0x109   :  { %1724 = vmatmul.mubr.msk.f32.gmra.mxu0 %vm719_vm5, %v658_v47  ;;  %1764 = vmatmul.mubr.msk.f32.gmra.mxu1 %vm719_vm5, %v698_v48 }
 0x10a   :  { %1192 = vmatprep.mubr.f32.mxu0 %v1855_v3  ;;  %1432 = vmatprep.mubr.f32.mxu1 %v1855_v3 }
 0x10d   :  { %1725 = vmatmul.mubr.msk.f32.gmra.mxu0 %vm719_vm5, %v659_v55  ;;  %1765 = vmatmul.mubr.msk.f32.gmra.mxu1 %vm719_vm5, %v699_v23 }
 0x10e   :  { %1198 = vmatprep.mubr.f32.mxu0 %v1855_v3  ;;  %1438 = vmatprep.mubr.f32.mxu1 %v1855_v3 }
 0x111   :  { %1726 = vmatmul.mubr.msk.f32.gmra.mxu0 %vm719_vm5, %v660_v12  ;;  %1766 = vmatmul.mubr.msk.f32.gmra.mxu1 %vm719_vm5, %v700_v37 }
 0x112   :  { %1204 = vmatprep.mubr.f32.mxu0 %v1855_v3  ;;  %1444 = vmatprep.mubr.f32.mxu1 %v1855_v3 }
 0x115   :  { %1727 = vmatmul.mubr.msk.f32.gmra.mxu0 %vm719_vm5, %v661_v26  ;;  %1767 = vmatmul.mubr.msk.f32.gmra.mxu1 %vm719_vm5, %v701_v53 }
 0x116   :  { %1210 = vmatprep.mubr.f32.mxu0 %v1855_v3  ;;  %1450 = vmatprep.mubr.f32.mxu1 %v1855_v3 }
 0x119   :  { %1728 = vmatmul.mubr.msk.f32.gmra.mxu0 %vm719_vm5, %v662_v4  ;;  %1768 = vmatmul.mubr.msk.f32.gmra.mxu1 %vm719_vm5, %v702_v1 }
 0x11a   :  { %1216 = vmatprep.mubr.f32.mxu0 %v1855_v3  ;;  %1456 = vmatprep.mubr.f32.mxu1 %v1855_v3 }
 0x11d   :  { %1729 = vmatmul.mubr.msk.f32.gmra.mxu0 %vm719_vm5, %v663_v56  ;;  %1769 = vmatmul.mubr.msk.f32.gmra.mxu1 %vm719_vm5, %v703_v6 }
 0x11e   :  { %1222 = vmatprep.mubr.f32.mxu0 %v1855_v3  ;;  %1462 = vmatprep.mubr.f32.mxu1 %v1855_v3 }
 0x121   :  { %1730 = vmatmul.mubr.msk.f32.gmra.mxu0 %vm719_vm5, %v664_v38  ;;  %1770 = vmatmul.mubr.msk.f32.gmra.mxu1 %vm719_vm5, %v704_v17 }
 0x122   :  { %1228 = vmatprep.mubr.f32.mxu0 %v1855_v3  ;;  %1468 = vmatprep.mubr.f32.mxu1 %v1855_v3 }
 0x125   :  { %1731 = vmatmul.mubr.msk.f32.gmra.mxu0 %vm719_vm5, %v665_v63  ;;  %1771 = vmatmul.mubr.msk.f32.gmra.mxu1 %vm719_vm5, %v705_v45 }
 0x126   :  { %1234 = vmatprep.mubr.f32.mxu0 %v1855_v3  ;;  %1474 = vmatprep.mubr.f32.mxu1 %v1855_v3 }
 0x129   :  { %1732 = vmatmul.mubr.msk.f32.gmra.mxu0 %vm719_vm5, %v666_v19  ;;  %1772 = vmatmul.mubr.msk.f32.gmra.mxu1 %vm719_vm5, %v706_v61 }
 0x12a   :  { %1240 = vmatprep.mubr.f32.mxu0 %v1855_v3  ;;  %1480 = vmatprep.mubr.f32.mxu1 %v1855_v3 }
 0x12d   :  { %1733 = vmatmul.mubr.msk.f32.gmra.mxu0 %vm719_vm5, %v667_v51  ;;  %1773 = vmatmul.mubr.msk.f32.gmra.mxu1 %vm719_vm5, %v707_v57 }
 0x12e   :  { %1246 = vmatprep.mubr.f32.mxu0 %v1855_v3  ;;  %1486 = vmatprep.mubr.f32.mxu1 %v1855_v3 }
 0x131   :  { %1734 = vmatmul.mubr.msk.f32.gmra.mxu0 %vm719_vm5, %v668_v60  ;;  %1774 = vmatmul.mubr.msk.f32.gmra.mxu1 %vm719_vm5, %v708_v9 }
 0x132   :  { %1252 = vmatprep.mubr.f32.mxu0 %v1855_v3  ;;  %1492 = vmatprep.mubr.f32.mxu1 %v1855_v3 }
 0x135   :  { %1735 = vmatmul.mubr.msk.f32.gmra.mxu0 %vm719_vm5, %v669_v62  ;;  %1775 = vmatmul.mubr.msk.f32.gmra.mxu1 %vm719_vm5, %v709_v29 }
 0x136   :  { %1258 = vmatprep.mubr.f32.mxu0 %v1855_v3  ;;  %1498 = vmatprep.mubr.f32.mxu1 %v1855_v3 }
 0x139   :  { %1736 = vmatmul.mubr.msk.f32.gmra.mxu0 %vm719_vm5, %v670_v2  ;;  %1776 = vmatmul.mubr.msk.f32.gmra.mxu1 %vm719_vm5, %v710_v7 }
 0x15d   :  { %v1026_v11 = vpop.f32.mrf.mxu0  ;;  %v1266_v54 = vpop.f32.mrf.mxu1 }
 0x15e   :  { %1505 = vst [vmem:[#allocation3] sm:$0xff] %v1026_v11  ;;  %1585 = vst [vmem:[#allocation3 + $0x280] sm:$0xff] %v1266_v54 }
 0x15f   :  { %v1028_v5 = vpop.f32.mrf.mxu0  ;;  %v1268_v42 = vpop.f32.mrf.mxu1 }
 0x160   :  { %1506 = vst [vmem:[#allocation3 + $0x8] sm:$0xff] %v1028_v5  ;;  %1586 = vst [vmem:[#allocation3 + $0x288] sm:$0xff] %v1268_v42 }
 0x161   :  { %v1032_v3 = vpop.f32.mrf.mxu0  ;;  %v1272_v13 = vpop.f32.mrf.mxu1 }
 0x162   :  { %1507 = vst [vmem:[#allocation3 + $0x10] sm:$0xff] %v1032_v3  ;;  %1587 = vst [vmem:[#allocation3 + $0x290] sm:$0xff] %v1272_v13 }
 0x163   :  { %v1034_v14 = vpop.f32.mrf.mxu0  ;;  %v1274_v15 = vpop.f32.mrf.mxu1 }
 0x164   :  { %1508 = vst [vmem:[#allocation3 + $0x18] sm:$0xff] %v1034_v14  ;;  %1588 = vst [vmem:[#allocation3 + $0x298] sm:$0xff] %v1274_v15 }
 0x165   :  { %v1038_v58 = vpop.f32.mrf.mxu0  ;;  %v1278_v16 = vpop.f32.mrf.mxu1 }
 0x166   :  { %1509 = vst [vmem:[#allocation3 + $0x20] sm:$0xff] %v1038_v58  ;;  %1589 = vst [vmem:[#allocation3 + $0x2a0] sm:$0xff] %v1278_v16 }
 0x167   :  { %v1040_v27 = vpop.f32.mrf.mxu0  ;;  %v1280_v21 = vpop.f32.mrf.mxu1 }
 0x168   :  { %1510 = vst [vmem:[#allocation3 + $0x28] sm:$0xff] %v1040_v27  ;;  %1590 = vst [vmem:[#allocation3 + $0x2a8] sm:$0xff] %v1280_v21 }
 0x169   :  { %v1044_v22 = vpop.f32.mrf.mxu0  ;;  %v1284_v40 = vpop.f32.mrf.mxu1 }
 0x16a   :  { %1511 = vst [vmem:[#allocation3 + $0x30] sm:$0xff] %v1044_v22  ;;  %1591 = vst [vmem:[#allocation3 + $0x2b0] sm:$0xff] %v1284_v40 }
 0x16b   :  { %v1046_v30 = vpop.f32.mrf.mxu0  ;;  %v1286_v36 = vpop.f32.mrf.mxu1 }
 0x16c   :  { %1512 = vst [vmem:[#allocation3 + $0x38] sm:$0xff] %v1046_v30  ;;  %1592 = vst [vmem:[#allocation3 + $0x2b8] sm:$0xff] %v1286_v36 }
 0x16d   :  { %v1050_v24 = vpop.f32.mrf.mxu0  ;;  %v1290_v10 = vpop.f32.mrf.mxu1 }
 0x16e   :  { %1513 = vst [vmem:[#allocation3 + $0x40] sm:$0xff] %v1050_v24  ;;  %1593 = vst [vmem:[#allocation3 + $0x2c0] sm:$0xff] %v1290_v10 }
 0x16f   :  { %v1052_v33 = vpop.f32.mrf.mxu0  ;;  %v1292_v31 = vpop.f32.mrf.mxu1 }
 0x170   :  { %1514 = vst [vmem:[#allocation3 + $0x48] sm:$0xff] %v1052_v33  ;;  %1594 = vst [vmem:[#allocation3 + $0x2c8] sm:$0xff] %v1292_v31 }
 0x171   :  { %v1056_v32 = vpop.f32.mrf.mxu0  ;;  %v1296_v28 = vpop.f32.mrf.mxu1 }
 0x172   :  { %1515 = vst [vmem:[#allocation3 + $0x50] sm:$0xff] %v1056_v32  ;;  %1595 = vst [vmem:[#allocation3 + $0x2d0] sm:$0xff] %v1296_v28 }
 0x173   :  { %v1058_v25 = vpop.f32.mrf.mxu0  ;;  %v1298_v52 = vpop.f32.mrf.mxu1 }
 0x174   :  { %1516 = vst [vmem:[#allocation3 + $0x58] sm:$0xff] %v1058_v25  ;;  %1596 = vst [vmem:[#allocation3 + $0x2d8] sm:$0xff] %v1298_v52 }
 0x175   :  { %v1062_v35 = vpop.f32.mrf.mxu0  ;;  %v1302_v46 = vpop.f32.mrf.mxu1 }
 0x176   :  { %1517 = vst [vmem:[#allocation3 + $0x60] sm:$0xff] %v1062_v35  ;;  %1597 = vst [vmem:[#allocation3 + $0x2e0] sm:$0xff] %v1302_v46 }
 0x177   :  { %v1064_v44 = vpop.f32.mrf.mxu0  ;;  %v1304_v39 = vpop.f32.mrf.mxu1 }
 0x178   :  { %1518 = vst [vmem:[#allocation3 + $0x68] sm:$0xff] %v1064_v44  ;;  %1598 = vst [vmem:[#allocation3 + $0x2e8] sm:$0xff] %v1304_v39 }
 0x179   :  { %v1068_v49 = vpop.f32.mrf.mxu0  ;;  %v1308_v18 = vpop.f32.mrf.mxu1 }
 0x17a   :  { %1519 = vst [vmem:[#allocation3 + $0x70] sm:$0xff] %v1068_v49  ;;  %1599 = vst [vmem:[#allocation3 + $0x2f0] sm:$0xff] %v1308_v18 }
 0x17b   :  { %v1070_v20 = vpop.f32.mrf.mxu0  ;;  %v1310_v50 = vpop.f32.mrf.mxu1 }
 0x17c   :  { %1520 = vst [vmem:[#allocation3 + $0x78] sm:$0xff] %v1070_v20  ;;  %1600 = vst [vmem:[#allocation3 + $0x2f8] sm:$0xff] %v1310_v50 }
 0x17d   :  { %v1074_v43 = vpop.f32.mrf.mxu0  ;;  %v1314_v41 = vpop.f32.mrf.mxu1 }
 0x17e   :  { %1521 = vst [vmem:[#allocation3 + $0x80] sm:$0xff] %v1074_v43  ;;  %1601 = vst [vmem:[#allocation3 + $0x300] sm:$0xff] %v1314_v41 }
 0x17f   :  { %v1076_v8 = vpop.f32.mrf.mxu0  ;;  %v1316_v0 = vpop.f32.mrf.mxu1 }
 0x180   :  { %1522 = vst [vmem:[#allocation3 + $0x88] sm:$0xff] %v1076_v8  ;;  %1602 = vst [vmem:[#allocation3 + $0x308] sm:$0xff] %v1316_v0 }
 0x181   :  { %v1080_v59 = vpop.f32.mrf.mxu0  ;;  %v1320_v34 = vpop.f32.mrf.mxu1 }
 0x182   :  { %1523 = vst [vmem:[#allocation3 + $0x90] sm:$0xff] %v1080_v59  ;;  %1603 = vst [vmem:[#allocation3 + $0x310] sm:$0xff] %v1320_v34 }
 0x183   :  { %v1082_v47 = vpop.f32.mrf.mxu0  ;;  %v1322_v48 = vpop.f32.mrf.mxu1 }
 0x184   :  { %1524 = vst [vmem:[#allocation3 + $0x98] sm:$0xff] %v1082_v47  ;;  %1604 = vst [vmem:[#allocation3 + $0x318] sm:$0xff] %v1322_v48 }
 0x185   :  { %v1086_v55 = vpop.f32.mrf.mxu0  ;;  %v1326_v23 = vpop.f32.mrf.mxu1 }
 0x186   :  { %1525 = vst [vmem:[#allocation3 + $0xa0] sm:$0xff] %v1086_v55  ;;  %1605 = vst [vmem:[#allocation3 + $0x320] sm:$0xff] %v1326_v23 }
 0x187   :  { %v1088_v12 = vpop.f32.mrf.mxu0  ;;  %v1328_v37 = vpop.f32.mrf.mxu1 }
 0x188   :  { %1526 = vst [vmem:[#allocation3 + $0xa8] sm:$0xff] %v1088_v12  ;;  %1606 = vst [vmem:[#allocation3 + $0x328] sm:$0xff] %v1328_v37 }
 0x189   :  { %v1092_v26 = vpop.f32.mrf.mxu0  ;;  %v1332_v53 = vpop.f32.mrf.mxu1 }
 0x18a   :  { %1527 = vst [vmem:[#allocation3 + $0xb0] sm:$0xff] %v1092_v26  ;;  %1607 = vst [vmem:[#allocation3 + $0x330] sm:$0xff] %v1332_v53 }
 0x18b   :  { %v1094_v4 = vpop.f32.mrf.mxu0  ;;  %v1334_v1 = vpop.f32.mrf.mxu1 }
 0x18c   :  { %1528 = vst [vmem:[#allocation3 + $0xb8] sm:$0xff] %v1094_v4  ;;  %1608 = vst [vmem:[#allocation3 + $0x338] sm:$0xff] %v1334_v1 }
 0x18d   :  { %v1098_v56 = vpop.f32.mrf.mxu0  ;;  %v1338_v6 = vpop.f32.mrf.mxu1 }
 0x18e   :  { %1529 = vst [vmem:[#allocation3 + $0xc0] sm:$0xff] %v1098_v56  ;;  %1609 = vst [vmem:[#allocation3 + $0x340] sm:$0xff] %v1338_v6 }
 0x18f   :  { %v1100_v38 = vpop.f32.mrf.mxu0  ;;  %v1340_v17 = vpop.f32.mrf.mxu1 }
 0x190   :  { %1530 = vst [vmem:[#allocation3 + $0xc8] sm:$0xff] %v1100_v38  ;;  %1610 = vst [vmem:[#allocation3 + $0x348] sm:$0xff] %v1340_v17 }
 0x191   :  { %v1104_v63 = vpop.f32.mrf.mxu0  ;;  %v1344_v45 = vpop.f32.mrf.mxu1 }
 0x192   :  { %1531 = vst [vmem:[#allocation3 + $0xd0] sm:$0xff] %v1104_v63  ;;  %1611 = vst [vmem:[#allocation3 + $0x350] sm:$0xff] %v1344_v45 }
 0x193   :  { %v1106_v19 = vpop.f32.mrf.mxu0  ;;  %v1346_v61 = vpop.f32.mrf.mxu1 }
 0x194   :  { %1532 = vst [vmem:[#allocation3 + $0xd8] sm:$0xff] %v1106_v19  ;;  %1612 = vst [vmem:[#allocation3 + $0x358] sm:$0xff] %v1346_v61 }
 0x195   :  { %v1110_v51 = vpop.f32.mrf.mxu0  ;;  %v1350_v57 = vpop.f32.mrf.mxu1 }
 0x196   :  { %1533 = vst [vmem:[#allocation3 + $0xe0] sm:$0xff] %v1110_v51  ;;  %1613 = vst [vmem:[#allocation3 + $0x360] sm:$0xff] %v1350_v57 }
 0x197   :  { %v1112_v60 = vpop.f32.mrf.mxu0  ;;  %v1352_v9 = vpop.f32.mrf.mxu1 }
 0x198   :  { %1534 = vst [vmem:[#allocation3 + $0xe8] sm:$0xff] %v1112_v60  ;;  %1614 = vst [vmem:[#allocation3 + $0x368] sm:$0xff] %v1352_v9 }
 0x199   :  { %v1116_v62 = vpop.f32.mrf.mxu0  ;;  %v1356_v29 = vpop.f32.mrf.mxu1 }
 0x19a   :  { %1535 = vst [vmem:[#allocation3 + $0xf0] sm:$0xff] %v1116_v62  ;;  %1615 = vst [vmem:[#allocation3 + $0x370] sm:$0xff] %v1356_v29 }
 0x19b   :  { %v1118_v2 = vpop.f32.mrf.mxu0  ;;  %v1358_v7 = vpop.f32.mrf.mxu1 }
 0x19c   :  { %1536 = vst [vmem:[#allocation3 + $0xf8] sm:$0xff] %v1118_v2  ;;  %1616 = vst [vmem:[#allocation3 + $0x378] sm:$0xff] %v1358_v7 }
 0x19d   :  { %v1122_v11 = vpop.f32.mrf.mxu0  ;;  %v1362_v54 = vpop.f32.mrf.mxu1 }
 0x19e   :  { %1537 = vst [vmem:[#allocation3 + $0x100] sm:$0xff] %v1122_v11  ;;  %1617 = vst [vmem:[#allocation3 + $0x380] sm:$0xff] %v1362_v54 }
 0x19f   :  { %v1124_v5 = vpop.f32.mrf.mxu0  ;;  %v1364_v42 = vpop.f32.mrf.mxu1 }
 0x1a0   :  { %1538 = vst [vmem:[#allocation3 + $0x108] sm:$0xff] %v1124_v5  ;;  %1618 = vst [vmem:[#allocation3 + $0x388] sm:$0xff] %v1364_v42 }
 0x1a1   :  { %v1128_v3 = vpop.f32.mrf.mxu0  ;;  %v1368_v13 = vpop.f32.mrf.mxu1 }
 0x1a2   :  { %1539 = vst [vmem:[#allocation3 + $0x110] sm:$0xff] %v1128_v3  ;;  %1619 = vst [vmem:[#allocation3 + $0x390] sm:$0xff] %v1368_v13 }
 0x1a3   :  { %v1130_v14 = vpop.f32.mrf.mxu0  ;;  %v1370_v15 = vpop.f32.mrf.mxu1 }
 0x1a4   :  { %1540 = vst [vmem:[#allocation3 + $0x118] sm:$0xff] %v1130_v14  ;;  %1620 = vst [vmem:[#allocation3 + $0x398] sm:$0xff] %v1370_v15 }
 0x1a5   :  { %v1134_v58 = vpop.f32.mrf.mxu0  ;;  %v1374_v16 = vpop.f32.mrf.mxu1 }
 0x1a6   :  { %1541 = vst [vmem:[#allocation3 + $0x120] sm:$0xff] %v1134_v58  ;;  %1621 = vst [vmem:[#allocation3 + $0x3a0] sm:$0xff] %v1374_v16 }
 0x1a7   :  { %v1136_v27 = vpop.f32.mrf.mxu0  ;;  %v1376_v21 = vpop.f32.mrf.mxu1 }
 0x1a8   :  { %1542 = vst [vmem:[#allocation3 + $0x128] sm:$0xff] %v1136_v27  ;;  %1622 = vst [vmem:[#allocation3 + $0x3a8] sm:$0xff] %v1376_v21 }
 0x1a9   :  { %v1140_v22 = vpop.f32.mrf.mxu0  ;;  %v1380_v40 = vpop.f32.mrf.mxu1 }
 0x1aa   :  { %1543 = vst [vmem:[#allocation3 + $0x130] sm:$0xff] %v1140_v22  ;;  %1623 = vst [vmem:[#allocation3 + $0x3b0] sm:$0xff] %v1380_v40 }
 0x1ab   :  { %v1142_v30 = vpop.f32.mrf.mxu0  ;;  %v1382_v36 = vpop.f32.mrf.mxu1 }
 0x1ac   :  { %1544 = vst [vmem:[#allocation3 + $0x138] sm:$0xff] %v1142_v30  ;;  %1624 = vst [vmem:[#allocation3 + $0x3b8] sm:$0xff] %v1382_v36 }
 0x1ad   :  { %v1146_v24 = vpop.f32.mrf.mxu0  ;;  %v1386_v10 = vpop.f32.mrf.mxu1 }
 0x1ae   :  { %1545 = vst [vmem:[#allocation3 + $0x140] sm:$0xff] %v1146_v24  ;;  %1625 = vst [vmem:[#allocation3 + $0x3c0] sm:$0xff] %v1386_v10 }
 0x1af   :  { %v1148_v33 = vpop.f32.mrf.mxu0  ;;  %v1388_v31 = vpop.f32.mrf.mxu1 }
 0x1b0   :  { %1546 = vst [vmem:[#allocation3 + $0x148] sm:$0xff] %v1148_v33  ;;  %1626 = vst [vmem:[#allocation3 + $0x3c8] sm:$0xff] %v1388_v31 }
 0x1b1   :  { %v1152_v32 = vpop.f32.mrf.mxu0  ;;  %v1392_v28 = vpop.f32.mrf.mxu1 }
 0x1b2   :  { %1547 = vst [vmem:[#allocation3 + $0x150] sm:$0xff] %v1152_v32  ;;  %1627 = vst [vmem:[#allocation3 + $0x3d0] sm:$0xff] %v1392_v28 }
 0x1b3   :  { %v1154_v25 = vpop.f32.mrf.mxu0  ;;  %v1394_v52 = vpop.f32.mrf.mxu1 }
 0x1b4   :  { %1548 = vst [vmem:[#allocation3 + $0x158] sm:$0xff] %v1154_v25  ;;  %1628 = vst [vmem:[#allocation3 + $0x3d8] sm:$0xff] %v1394_v52 }
 0x1b5   :  { %v1158_v35 = vpop.f32.mrf.mxu0  ;;  %v1398_v46 = vpop.f32.mrf.mxu1 }
 0x1b6   :  { %1549 = vst [vmem:[#allocation3 + $0x160] sm:$0xff] %v1158_v35  ;;  %1629 = vst [vmem:[#allocation3 + $0x3e0] sm:$0xff] %v1398_v46 }
 0x1b7   :  { %v1160_v44 = vpop.f32.mrf.mxu0  ;;  %v1400_v39 = vpop.f32.mrf.mxu1 }
 0x1b8   :  { %1550 = vst [vmem:[#allocation3 + $0x168] sm:$0xff] %v1160_v44  ;;  %1630 = vst [vmem:[#allocation3 + $0x3e8] sm:$0xff] %v1400_v39 }
 0x1b9   :  { %v1164_v49 = vpop.f32.mrf.mxu0  ;;  %v1404_v18 = vpop.f32.mrf.mxu1 }
 0x1ba   :  { %1551 = vst [vmem:[#allocation3 + $0x170] sm:$0xff] %v1164_v49  ;;  %1631 = vst [vmem:[#allocation3 + $0x3f0] sm:$0xff] %v1404_v18 }
 0x1bb   :  { %v1166_v20 = vpop.f32.mrf.mxu0  ;;  %v1406_v50 = vpop.f32.mrf.mxu1 }
 0x1bc   :  { %1552 = vst [vmem:[#allocation3 + $0x178] sm:$0xff] %v1166_v20  ;;  %1632 = vst [vmem:[#allocation3 + $0x3f8] sm:$0xff] %v1406_v50 }
 0x1bd   :  { %v1170_v43 = vpop.f32.mrf.mxu0  ;;  %v1410_v41 = vpop.f32.mrf.mxu1 }
 0x1be   :  { %1553 = vst [vmem:[#allocation3 + $0x180] sm:$0xff] %v1170_v43  ;;  %1633 = vst [vmem:[#allocation3 + $0x400] sm:$0xff] %v1410_v41 }
 0x1bf   :  { %v1172_v8 = vpop.f32.mrf.mxu0  ;;  %v1412_v0 = vpop.f32.mrf.mxu1 }
 0x1c0   :  { %1554 = vst [vmem:[#allocation3 + $0x188] sm:$0xff] %v1172_v8  ;;  %1634 = vst [vmem:[#allocation3 + $0x408] sm:$0xff] %v1412_v0 }
 0x1c1   :  { %v1176_v59 = vpop.f32.mrf.mxu0  ;;  %v1416_v34 = vpop.f32.mrf.mxu1 }
 0x1c2   :  { %1555 = vst [vmem:[#allocation3 + $0x190] sm:$0xff] %v1176_v59  ;;  %1635 = vst [vmem:[#allocation3 + $0x410] sm:$0xff] %v1416_v34 }
 0x1c3   :  { %v1178_v47 = vpop.f32.mrf.mxu0  ;;  %v1418_v48 = vpop.f32.mrf.mxu1 }
 0x1c4   :  { %1556 = vst [vmem:[#allocation3 + $0x198] sm:$0xff] %v1178_v47  ;;  %1636 = vst [vmem:[#allocation3 + $0x418] sm:$0xff] %v1418_v48 }
 0x1c5   :  { %v1182_v55 = vpop.f32.mrf.mxu0  ;;  %v1422_v23 = vpop.f32.mrf.mxu1 }
 0x1c6   :  { %1557 = vst [vmem:[#allocation3 + $0x1a0] sm:$0xff] %v1182_v55  ;;  %1637 = vst [vmem:[#allocation3 + $0x420] sm:$0xff] %v1422_v23 }
 0x1c7   :  { %v1184_v12 = vpop.f32.mrf.mxu0  ;;  %v1424_v37 = vpop.f32.mrf.mxu1 }
 0x1c8   :  { %1558 = vst [vmem:[#allocation3 + $0x1a8] sm:$0xff] %v1184_v12  ;;  %1638 = vst [vmem:[#allocation3 + $0x428] sm:$0xff] %v1424_v37 }
 0x1c9   :  { %v1188_v26 = vpop.f32.mrf.mxu0  ;;  %v1428_v53 = vpop.f32.mrf.mxu1 }
 0x1ca   :  { %1559 = vst [vmem:[#allocation3 + $0x1b0] sm:$0xff] %v1188_v26  ;;  %1639 = vst [vmem:[#allocation3 + $0x430] sm:$0xff] %v1428_v53 }
 0x1cb   :  { %v1190_v4 = vpop.f32.mrf.mxu0  ;;  %v1430_v1 = vpop.f32.mrf.mxu1 }
 0x1cc   :  { %1560 = vst [vmem:[#allocation3 + $0x1b8] sm:$0xff] %v1190_v4  ;;  %1640 = vst [vmem:[#allocation3 + $0x438] sm:$0xff] %v1430_v1 }
 0x1cd   :  { %v1194_v56 = vpop.f32.mrf.mxu0  ;;  %v1434_v6 = vpop.f32.mrf.mxu1 }
 0x1ce   :  { %1561 = vst [vmem:[#allocation3 + $0x1c0] sm:$0xff] %v1194_v56  ;;  %1641 = vst [vmem:[#allocation3 + $0x440] sm:$0xff] %v1434_v6 }
 0x1cf   :  { %v1196_v38 = vpop.f32.mrf.mxu0  ;;  %v1436_v17 = vpop.f32.mrf.mxu1 }
 0x1d0   :  { %1562 = vst [vmem:[#allocation3 + $0x1c8] sm:$0xff] %v1196_v38  ;;  %1642 = vst [vmem:[#allocation3 + $0x448] sm:$0xff] %v1436_v17 }
 0x1d1   :  { %v1200_v63 = vpop.f32.mrf.mxu0  ;;  %v1440_v45 = vpop.f32.mrf.mxu1 }
 0x1d2   :  { %1563 = vst [vmem:[#allocation3 + $0x1d0] sm:$0xff] %v1200_v63  ;;  %1643 = vst [vmem:[#allocation3 + $0x450] sm:$0xff] %v1440_v45 }
 0x1d3   :  { %v1202_v19 = vpop.f32.mrf.mxu0  ;;  %v1442_v61 = vpop.f32.mrf.mxu1 }
 0x1d4   :  { %1564 = vst [vmem:[#allocation3 + $0x1d8] sm:$0xff] %v1202_v19  ;;  %1644 = vst [vmem:[#allocation3 + $0x458] sm:$0xff] %v1442_v61 }
 0x1d5   :  { %v1206_v51 = vpop.f32.mrf.mxu0  ;;  %v1446_v57 = vpop.f32.mrf.mxu1 }
 0x1d6   :  { %1565 = vst [vmem:[#allocation3 + $0x1e0] sm:$0xff] %v1206_v51  ;;  %1645 = vst [vmem:[#allocation3 + $0x460] sm:$0xff] %v1446_v57 }
 0x1d7   :  { %v1208_v60 = vpop.f32.mrf.mxu0  ;;  %v1448_v9 = vpop.f32.mrf.mxu1 }
 0x1d8   :  { %1566 = vst [vmem:[#allocation3 + $0x1e8] sm:$0xff] %v1208_v60  ;;  %1646 = vst [vmem:[#allocation3 + $0x468] sm:$0xff] %v1448_v9 }
 0x1d9   :  { %v1212_v62 = vpop.f32.mrf.mxu0  ;;  %v1452_v29 = vpop.f32.mrf.mxu1 }
 0x1da   :  { %1567 = vst [vmem:[#allocation3 + $0x1f0] sm:$0xff] %v1212_v62  ;;  %1647 = vst [vmem:[#allocation3 + $0x470] sm:$0xff] %v1452_v29 }
 0x1db   :  { %v1214_v2 = vpop.f32.mrf.mxu0  ;;  %v1454_v7 = vpop.f32.mrf.mxu1 }
 0x1dc   :  { %1568 = vst [vmem:[#allocation3 + $0x1f8] sm:$0xff] %v1214_v2  ;;  %1648 = vst [vmem:[#allocation3 + $0x478] sm:$0xff] %v1454_v7 }
 0x1dd   :  { %v1218_v11 = vpop.f32.mrf.mxu0  ;;  %v1458_v54 = vpop.f32.mrf.mxu1 }
 0x1de   :  { %1569 = vst [vmem:[#allocation3 + $0x200] sm:$0xff] %v1218_v11  ;;  %1649 = vst [vmem:[#allocation3 + $0x480] sm:$0xff] %v1458_v54 }
 0x1df   :  { %v1220_v5 = vpop.f32.mrf.mxu0  ;;  %v1460_v42 = vpop.f32.mrf.mxu1 }
 0x1e0   :  { %1570 = vst [vmem:[#allocation3 + $0x208] sm:$0xff] %v1220_v5  ;;  %1650 = vst [vmem:[#allocation3 + $0x488] sm:$0xff] %v1460_v42 }
 0x1e1   :  { %v1224_v3 = vpop.f32.mrf.mxu0  ;;  %v1464_v13 = vpop.f32.mrf.mxu1 }
 0x1e2   :  { %1571 = vst [vmem:[#allocation3 + $0x210] sm:$0xff] %v1224_v3  ;;  %1651 = vst [vmem:[#allocation3 + $0x490] sm:$0xff] %v1464_v13 }
 0x1e3   :  { %v1226_v14 = vpop.f32.mrf.mxu0  ;;  %v1466_v15 = vpop.f32.mrf.mxu1 }
 0x1e4   :  { %1572 = vst [vmem:[#allocation3 + $0x218] sm:$0xff] %v1226_v14  ;;  %1652 = vst [vmem:[#allocation3 + $0x498] sm:$0xff] %v1466_v15 }
 0x1e5   :  { %v1230_v58 = vpop.f32.mrf.mxu0  ;;  %v1470_v16 = vpop.f32.mrf.mxu1 }
 0x1e6   :  { %1573 = vst [vmem:[#allocation3 + $0x220] sm:$0xff] %v1230_v58  ;;  %1653 = vst [vmem:[#allocation3 + $0x4a0] sm:$0xff] %v1470_v16 }
 0x1e7   :  { %v1232_v27 = vpop.f32.mrf.mxu0  ;;  %v1472_v21 = vpop.f32.mrf.mxu1 }
 0x1e8   :  { %1574 = vst [vmem:[#allocation3 + $0x228] sm:$0xff] %v1232_v27  ;;  %1654 = vst [vmem:[#allocation3 + $0x4a8] sm:$0xff] %v1472_v21 }
 0x1e9   :  { %v1236_v22 = vpop.f32.mrf.mxu0  ;;  %v1476_v40 = vpop.f32.mrf.mxu1 }
 0x1ea   :  { %1575 = vst [vmem:[#allocation3 + $0x230] sm:$0xff] %v1236_v22  ;;  %1655 = vst [vmem:[#allocation3 + $0x4b0] sm:$0xff] %v1476_v40 }
 0x1eb   :  { %v1238_v30 = vpop.f32.mrf.mxu0  ;;  %v1478_v36 = vpop.f32.mrf.mxu1 }
 0x1ec   :  { %1576 = vst [vmem:[#allocation3 + $0x238] sm:$0xff] %v1238_v30  ;;  %1656 = vst [vmem:[#allocation3 + $0x4b8] sm:$0xff] %v1478_v36 }
 0x1ed   :  { %v1242_v24 = vpop.f32.mrf.mxu0  ;;  %v1482_v10 = vpop.f32.mrf.mxu1 }
 0x1ee   :  { %1577 = vst [vmem:[#allocation3 + $0x240] sm:$0xff] %v1242_v24  ;;  %1657 = vst [vmem:[#allocation3 + $0x4c0] sm:$0xff] %v1482_v10 }
 0x1ef   :  { %v1244_v33 = vpop.f32.mrf.mxu0  ;;  %v1484_v31 = vpop.f32.mrf.mxu1 }
 0x1f0   :  { %1578 = vst [vmem:[#allocation3 + $0x248] sm:$0xff] %v1244_v33  ;;  %1658 = vst [vmem:[#allocation3 + $0x4c8] sm:$0xff] %v1484_v31 }
 0x1f1   :  { %v1248_v32 = vpop.f32.mrf.mxu0  ;;  %v1488_v28 = vpop.f32.mrf.mxu1 }
 0x1f2   :  { %1579 = vst [vmem:[#allocation3 + $0x250] sm:$0xff] %v1248_v32  ;;  %1659 = vst [vmem:[#allocation3 + $0x4d0] sm:$0xff] %v1488_v28 }
 0x1f3   :  { %v1250_v25 = vpop.f32.mrf.mxu0  ;;  %v1490_v52 = vpop.f32.mrf.mxu1 }
 0x1f4   :  { %1580 = vst [vmem:[#allocation3 + $0x258] sm:$0xff] %v1250_v25  ;;  %1660 = vst [vmem:[#allocation3 + $0x4d8] sm:$0xff] %v1490_v52 }
 0x1f5   :  { %v1254_v35 = vpop.f32.mrf.mxu0  ;;  %v1494_v46 = vpop.f32.mrf.mxu1 }
 0x1f6   :  { %1581 = vst [vmem:[#allocation3 + $0x260] sm:$0xff] %v1254_v35  ;;  %1661 = vst [vmem:[#allocation3 + $0x4e0] sm:$0xff] %v1494_v46 }
 0x1f7   :  { %v1256_v44 = vpop.f32.mrf.mxu0  ;;  %v1496_v39 = vpop.f32.mrf.mxu1 }
 0x1f8   :  { %1582 = vst [vmem:[#allocation3 + $0x268] sm:$0xff] %v1256_v44  ;;  %1662 = vst [vmem:[#allocation3 + $0x4e8] sm:$0xff] %v1496_v39 }
 0x1f9   :  { %v1260_v49 = vpop.f32.mrf.mxu0  ;;  %v1500_v18 = vpop.f32.mrf.mxu1 }
 0x1fa   :  { %1583 = vst [vmem:[#allocation3 + $0x270] sm:$0xff] %v1260_v49  ;;  %1663 = vst [vmem:[#allocation3 + $0x4f0] sm:$0xff] %v1500_v18 }
 0x1fb   :  { %v1262_v20 = vpop.f32.mrf.mxu0  ;;  %v1502_v50 = vpop.f32.mrf.mxu1 }
 0x1fc   :  { %1584 = vst [vmem:[#allocation3 + $0x278] sm:$0xff] %v1262_v20  ;;  %1664 = vst [vmem:[#allocation3 + $0x4f8] sm:$0xff] %v1502_v50 }
 0x1fd   :  { %1844 = shalt.err (!%p1841_p4)
}
 0x1fe   :  { %s1865_s5 = smov 256   ;;  %s1866_s6 = smov 16  }
 0x1ff   :  { %1676 = dma.vmem_to_hbm [thread:$0]  %s1671_s3, 20480, %s2769_s2, [#allocation4], %s1865_s5, %s1865_s5, %s1866_s6  }
 0x200   :  { %1853 = dma.done.wait [#allocation4], 20480  }
 0x201   :  { %1854 = vsyncadd [#allocation4], 4294946816 }
 0x202   :  { %1680 = vsyncpa [#allocation4], 1 }

</bundles_post_ra>
